<compile_context>
chip_gen: v7x
topology: tpu7x:2x2x1
jax: 0.10.0
libtpu: 0.0.40
codegen_flags: <defaults>
</compile_context>

<pallas_src>
import functools
import math

import jax
import jax.numpy as jnp
import numpy as np
from jax import lax
from jax.experimental import pallas as pl
from jax.experimental.pallas import tpu as pltpu

_LOG_2PI = math.log(2.0 * math.pi)


def _log_density_gaussian(x, mu, logvar):
    norm = -0.5 * (_LOG_2PI + logvar)
    return norm - 0.5 * ((x - mu) ** 2 * jnp.exp(-logvar))


# ----------------------------------------------------------------------------
# Kernel
# ----------------------------------------------------------------------------
def _beta_tcvae_loss_kernel(scal_ref,                       # SMEM (4,) [alpha, kl_beta, gamma, anneal]
                            real_ref, fake_ref,             # VMEM (B, TILE_F)  feature tile
                            mean_ref, logvar_ref, eps_ref,  # VMEM (B, D)
                            logiw_ref,                      # VMEM (B, B)
                            out_ref,                        # SMEM (6,) outputs
                            sse_ref, kl_ref,                # SMEM scratch (1,), (3,)
                            *, batch_size, latent_dim):
    f = pl.program_id(0)
    nf = pl.num_programs(0)

    # ------------------ reconstruction SSE (tiled, accumulated) -------------
    @pl.when(f == 0)
    def _init():
        sse_ref[0] = jnp.float32(0.0)

    diff = fake_ref[...].astype(jnp.float32) - real_ref[...].astype(jnp.float32)
    sse_ref[0] += jnp.sum(diff * diff)

    # ------------------ KL / TC / MI terms: once, on the first step ---------
    # (Computed at step 0 so it overlaps the DMAs of the remaining recon tiles.)
    @pl.when(f == 0)
    def _kl():
        mean = mean_ref[...].astype(jnp.float32)
        logvar = logvar_ref[...].astype(jnp.float32)
        eps = eps_ref[...].astype(jnp.float32)
        logiw = logiw_ref[...]

        iv = jnp.exp(-logvar)          # exp(-logvar), hoisted & reused
        std = jnp.exp(0.5 * logvar)
        z = eps * std + mean           # reparameterization trick

        # log q(z|x) and log p(z), summed over latent dim -> [B, 1]
        log_q_zx = jnp.sum(-0.5 * (_LOG_2PI + logvar)
                           - 0.5 * ((z - mean) ** 2) * iv,
                           axis=1, keepdims=True)
        # p(z) = N(0, I):  norm = -0.5*log(2pi), quad = -0.5*z^2
        log_p_z = jnp.sum(-0.5 * (_LOG_2PI + z * z), axis=1, keepdims=True)

        # ---- sum_d of pairwise log densities via MXU matmuls (no [B,B,D]) --
        # sum_d logN(z_i; mean_j, logvar_j)
        #   = -0.5 * ( (z*z)@iv_j - 2*z@(mean*iv)_j
        #              + sum_d(mean_j^2*iv_j + LOG_2PI + logvar_j) )
        nt = (((1,), (1,)), ((), ()))  # contract last dims (A @ B^T)
        miv = mean * iv
        zz_iv = lax.dot_general(z * z, iv, nt,
                                preferred_element_type=jnp.float32)   # [B, B]
        zm_iv = lax.dot_general(z, miv, nt,
                                preferred_element_type=jnp.float32)   # [B, B]
        cc = mean * miv + (_LOG_2PI + logvar)                         # [B, D]
        c_row = lax.dot_general(jnp.ones((1, latent_dim), jnp.float32), cc, nt,
                                preferred_element_type=jnp.float32)   # [1, B]
        s = (-0.5 * (zz_iv - 2.0 * zm_iv + c_row)
             + jnp.float32(latent_dim) * logiw)                       # [B, B]

        # log_q_z[i] = logsumexp_j s[i, j]   -> [B, 1]
        m1 = jnp.max(s, axis=1, keepdims=True)
        log_q_z = m1 + jnp.log(jnp.sum(jnp.exp(s - m1), axis=1, keepdims=True))

        # log_prod_q_z[i] = sum_d logsumexp_j mat[i, j, d]  (needs per-d tensor)
        mat = (-0.5 * (_LOG_2PI + logvar[None, :, :])
               - 0.5 * ((z[:, None, :] - mean[None, :, :]) ** 2) * iv[None, :, :]
               + logiw[:, :, None])                                   # [B, B, D]
        m2 = jnp.max(mat, axis=1, keepdims=True)                      # [B, 1, D]
        lse = m2[:, 0, :] + jnp.log(jnp.sum(jnp.exp(mat - m2), axis=1))  # [B, D]
        log_prod_q_z = jnp.sum(lse, axis=1, keepdims=True)            # [B, 1]

        kl_ref[0] = jnp.mean(log_q_zx - log_q_z)        # MI loss
        kl_ref[1] = jnp.mean(log_q_z - log_prod_q_z)    # TC loss
        kl_ref[2] = jnp.mean(log_prod_q_z - log_p_z)    # KLD loss

    # ------------------ finalize on the last feature tile -------------------
    @pl.when(f == nf - 1)
    def _finalize():
        recons = sse_ref[0]
        mi = kl_ref[0]
        tc = kl_ref[1]
        kld = kl_ref[2]
        alpha = scal_ref[0]
        kl_beta = scal_ref[1]
        gamma = scal_ref[2]
        anneal = scal_ref[3]
        weight = jnp.float32(1.0)
        loss = (recons / batch_size
                + alpha * mi
                + weight * (kl_beta * tc + anneal * gamma * kld))
        out_ref[0] = loss
        out_ref[1] = recons
        out_ref[2] = kld
        out_ref[3] = jnp.float32(0.0)   # triplet_loss (always 0 in the module)
        out_ref[4] = tc
        out_ref[5] = mi


# ----------------------------------------------------------------------------
# Host-side helpers
# ----------------------------------------------------------------------------
def _pick_tile_f(total_f, max_lanes=2048):
    """Largest multiple-of-128 divisor of total_f up to max_lanes (lane-dense)."""
    if total_f <= max_lanes or total_f % 128 != 0:
        return total_f
    for cand in range(max_lanes, 127, -128):
        if total_f % cand == 0:
            return cand
    return total_f


@functools.lru_cache(maxsize=None)
def _log_importance_weights(batch_size, dataset_size):
    """Matches the PyTorch strided fill_/view(-1)[::B] pattern; cached per config."""
    B = int(batch_size)
    N = int(dataset_size)
    strat_weight = (N - B + 1) / (N * (B - 1))
    iw = np.full((B, B), 1.0 / (B - 1), dtype=np.float32)
    flat = iw.reshape(-1)            # view: writes propagate
    flat[::B] = 1.0 / N
    flat[1::B] = strat_weight
    iw[B - 2, 0] = strat_weight
    return jnp.asarray(np.log(iw), dtype=jnp.float32)


@functools.lru_cache(maxsize=None)
def _build_loss_fn(batch_size, latent_dim, total_f, tile_f):
    nf = total_f // tile_f
    kernel = functools.partial(_beta_tcvae_loss_kernel,
                               batch_size=batch_size, latent_dim=latent_dim)
    grid_spec = pltpu.PrefetchScalarGridSpec(
        num_scalar_prefetch=1,                  # (4,) runtime scalars -> SMEM
        grid=(nf,),                             # feature tiles of the recon SSE
        in_specs=[
            pl.BlockSpec((batch_size, tile_f), lambda f, s: (0, f)),      # real
            pl.BlockSpec((batch_size, tile_f), lambda f, s: (0, f)),      # fake
            pl.BlockSpec((batch_size, latent_dim), lambda f, s: (0, 0)),  # mean
            pl.BlockSpec((batch_size, latent_dim), lambda f, s: (0, 0)),  # log_var
            pl.BlockSpec((batch_size, latent_dim), lambda f, s: (0, 0)),  # eps
            pl.BlockSpec((batch_size, batch_size), lambda f, s: (0, 0)),  # log_iw
        ],
        out_specs=pl.BlockSpec(memory_space=pltpu.MemorySpace.SMEM),
        scratch_shapes=[
            pltpu.SMEM((1,), jnp.float32),      # SSE accumulator
            pltpu.SMEM((3,), jnp.float32),      # (mi, tc, kld)
        ],
    )
    fn = pl.pallas_call(
        kernel,
        out_shape=jax.ShapeDtypeStruct((6,), jnp.float32),
        grid_spec=grid_spec,
        compiler_params=pltpu.CompilerParams(
            dimension_semantics=("arbitrary",)),  # accumulator resident across tiles
    )
    return jax.jit(fn)


# ----------------------------------------------------------------------------
# Module wrapper
# ----------------------------------------------------------------------------
class BetaTCVAELoss:
    """JAX/Pallas port of the PyTorch BetaTCVAELoss module (forward pass)."""

    def __init__(self, gamma=0.0, kl_beta=0.0, dataset_size=0,
                 anneal_steps=10000, alpha=1):
        # nn.Linear(1, 1) of the original module (never used in forward);
        # kept only as dummy parameters for parity.
        self.empty_linear_weight = jnp.full((1, 1), 0.5, jnp.float32)
        self.empty_linear_bias = jnp.zeros((1,), jnp.float32)
        self.dataset_size = dataset_size
        self.anneal_steps = anneal_steps
        self.alpha = alpha
        self.num_iter = 0
        # Faithful to the PyTorch __init__, which overrides the ctor args with 0.
        self.gamma = 0.0
        self.kl_beta = 0.0

    def __call__(self, real_data, fake_data, mean, log_var, triplet_data,
                 eps, **kwargs):
        # TODO(synk): the PyTorch module draws eps with torch.randn_like inside
        # reparameterize; here eps is an explicit input for determinism.
        test_mode = kwargs.get('test_mode', False)
        anchor, positive, negative, attribute_index = triplet_data  # unused

        B, D = mean.shape
        real_flat = real_data.reshape(B, -1)       # native dtype; upcast in-kernel
        fake_flat = fake_data.reshape(B, -1)
        total_f = real_flat.shape[1]
        tile_f = _pick_tile_f(total_f)

        log_iw = _log_importance_weights(B, self.dataset_size)

        if not test_mode:
            self.num_iter += 1
            anneal_rate = min(0 + 1 * self.num_iter / self.anneal_steps, 1)
        else:
            anneal_rate = 1.0

        # Runtime scalars: changing anneal_rate does NOT trigger a recompile.
        scalars = jnp.array([self.alpha, self.kl_beta, self.gamma, anneal_rate],
                            dtype=jnp.float32)

        fn = _build_loss_fn(B, D, total_f, tile_f)
        out = fn(scalars, real_flat, fake_flat, mean, log_var, eps, log_iw)

        return {
            'loss': out[0],
            'recon_loss': out[1],
            'kl_divergence_loss': out[2],
            'triplet_loss': jnp.array([0.0], dtype=jnp.float32),
            'TC_Loss': out[4],
            'MI_Loss': out[5],
        }


# ----------------------------------------------------------------------------
# Pure-JAX reference (for correctness checking only)
# ----------------------------------------------------------------------------
def _reference(real, fake, mean, log_var, eps, log_iw, alpha, kl_beta, gamma,
               anneal_rate):
    B, D = mean.shape
    z = eps * jnp.exp(0.5 * log_var) + mean
    recons_loss = jnp.sum((fake - real) ** 2)
    log_q_zx = jnp.sum(_log_density_gaussian(z, mean, log_var), axis=1)
    log_p_z = jnp.sum(_log_density_gaussian(z, jnp.zeros_like(z),
                                            jnp.zeros_like(z)), axis=1)
    mat = _log_density_gaussian(z[:, None, :], mean[None, :, :],
                                log_var[None, :, :]) + log_iw[:, :, None]
    log_q_z = jax.scipy.special.logsumexp(mat.sum(2), axis=1)
    log_prod_q_z = jax.scipy.special.logsumexp(mat, axis=1).sum(1)
    mi_loss = jnp.mean(log_q_zx - log_q_z)
    tc_loss = jnp.mean(log_q_z - log_prod_q_z)
    kld_loss = jnp.mean(log_prod_q_z - log_p_z)
    loss = (recons_loss / B + alpha * mi_loss
            + (kl_beta * tc_loss + anneal_rate * gamma * kld_loss))
    return loss, recons_loss, kld_loss, tc_loss, mi_loss


if __name__ == "__main__":
    key = jax.random.PRNGKey(0)
    k_real, k_fake, k_mean, k_lv, k_eps = jax.random.split(key, 5)

    B, C, H, W, D = 8, 4, 32, 32, 32          # C*H*W = 4096 -> 2 feature tiles
    dataset_size = 100

    real = jax.random.normal(k_real, (B, C, H, W), dtype=jnp.float32)
    fake = real + 0.1 * jax.random.normal(k_fake, (B, C, H, W), dtype=jnp.float32)
    mean = jax.random.normal(k_mean, (B, D), dtype=jnp.float32)
    log_var = 0.1 * jax.random.normal(k_lv, (B, D), dtype=jnp.float32)
    eps = jax.random.normal(k_eps, (B, D), dtype=jnp.float32)

    # Dummy triplet data (unused by the loss except for unpacking).
    triplet_data = (real, real, real, 0)

    module = BetaTCVAELoss(gamma=1.0, kl_beta=1.0, dataset_size=dataset_size,
                           anneal_steps=10000, alpha=1)
    result = module(real, fake, mean, log_var, triplet_data, eps)
    jax.block_until_ready(result['loss'])

    # Second call: anneal_rate changes but no recompile (scalars are runtime input).
    result2 = module(real, fake, mean, log_var, triplet_data, eps)
    jax.block_until_ready(result2['loss'])

    # Correctness check against the pure-JAX reference (first call, num_iter=1).
    log_iw = _log_importance_weights(B, dataset_size)
    ref_loss, ref_rec, ref_kld, ref_tc, ref_mi = _reference(
        real.reshape(B, -1), fake.reshape(B, -1), mean, log_var, eps, log_iw,
        alpha=1.0, kl_beta=0.0, gamma=0.0,
        anneal_rate=min(1 / 10000, 1))

    def _close(a, b):
        return bool(jnp.allclose(a, b, rtol=5e-4, atol=5e-3))

    assert _close(result['loss'], ref_loss)
    assert _close(result['recon_loss'], ref_rec)
    assert _close(result['kl_divergence_loss'], ref_kld)
    assert _close(result['TC_Loss'], ref_tc)
    assert _close(result['MI_Loss'], ref_mi)

    print("KERNEL_OK")
</pallas_src>

<mosaic_0001>
module attributes {stable_mosaic.version = 11 : i64} {
  func.func @_beta_tcvae_loss_kernel(%arg0: i32, %arg1: memref<4xf32, #tpu.memory_space<smem>>, %arg2: memref<8x2048xf32, #tpu.memory_space<vmem>>, %arg3: memref<8x2048xf32, #tpu.memory_space<vmem>>, %arg4: memref<8x32xf32, #tpu.memory_space<vmem>>, %arg5: memref<8x32xf32, #tpu.memory_space<vmem>>, %arg6: memref<8x32xf32, #tpu.memory_space<vmem>>, %arg7: memref<8x8xf32, #tpu.memory_space<vmem>>, %arg8: memref<6xf32, #tpu.memory_space<smem>>, %arg9: memref<1xf32, #tpu.memory_space<smem>>, %arg10: memref<3xf32, #tpu.memory_space<smem>>) attributes {dimension_semantics = [#tpu.dimension_semantics<arbitrary>], iteration_bounds = array<i64: 2>, scalar_prefetch = 1 : i64, scratch_operands = 2 : i64, tpu.core_type = #tpu.core_type<tc>, window_params = [{transform_indices = @transform_0, window_bounds = array<i64: 8, 2048>}, {transform_indices = @transform_1, window_bounds = array<i64: 8, 2048>}, {pipeline_mode = #tpu.pipeline_mode<synchronous>, transform_indices = @transform_2, window_bounds = array<i64: 8, 32>}, {pipeline_mode = #tpu.pipeline_mode<synchronous>, transform_indices = @transform_3, window_bounds = array<i64: 8, 32>}, {pipeline_mode = #tpu.pipeline_mode<synchronous>, transform_indices = @transform_4, window_bounds = array<i64: 8, 32>}, {pipeline_mode = #tpu.pipeline_mode<synchronous>, transform_indices = @transform_5, window_bounds = array<i64: 8, 8>}, {transform_indices = @transform_6, window_bounds = array<i64: 6>}]} {
    %c0_i32 = arith.constant 0 : i32
    %0 = arith.cmpi eq, %arg0, %c0_i32 : i32
    %1 = arith.extui %0 : i1 to i32
    %c0_i32_0 = arith.constant 0 : i32
    %2 = arith.cmpi ne, %1, %c0_i32_0 : i32
    scf.if %2 {
      %cst_9 = arith.constant 0.000000e+00 : f32
      %c0_10 = arith.constant 0 : index
      %20 = memref.load %arg9[%c0_10] : memref<1xf32, #tpu.memory_space<smem>>
      memref.store %cst_9, %arg9[%c0_10] : memref<1xf32, #tpu.memory_space<smem>>
    } else {
    }
    %c0 = arith.constant 0 : index
    %c0_1 = arith.constant 0 : index
    %3 = vector.load %arg3[%c0, %c0_1] : memref<8x2048xf32, #tpu.memory_space<vmem>>, vector<8x2048xf32>
    %c0_2 = arith.constant 0 : index
    %c0_3 = arith.constant 0 : index
    %4 = vector.load %arg2[%c0_2, %c0_3] : memref<8x2048xf32, #tpu.memory_space<vmem>>, vector<8x2048xf32>
    %5 = arith.subf %3, %4 : vector<8x2048xf32>
    %c0_4 = arith.constant 0 : index
    %6 = memref.load %arg9[%c0_4] : memref<1xf32, #tpu.memory_space<smem>>
    %7 = arith.mulf %5, %5 : vector<8x2048xf32>
    %8 = vector.shape_cast %7 : vector<8x2048xf32> to vector<1x8x2048xf32>
    %cst = arith.constant dense<0.000000e+00> : vector<1xf32>
    %9 = vector.multi_reduction <add>, %8, %cst [1, 2] : vector<1x8x2048xf32> to vector<1xf32>
    %10 = vector.shape_cast %9 : vector<1xf32> to vector<1x1x1xf32>
    %11 = vector.extract %10[0, 0, 0] : f32 from vector<1x1x1xf32>
    %12 = arith.addf %6, %11 : f32
    %c0_5 = arith.constant 0 : index
    %13 = memref.load %arg9[%c0_5] : memref<1xf32, #tpu.memory_space<smem>>
    memref.store %12, %arg9[%c0_5] : memref<1xf32, #tpu.memory_space<smem>>
    %c0_i32_6 = arith.constant 0 : i32
    %14 = arith.cmpi eq, %arg0, %c0_i32_6 : i32
    %15 = arith.extui %14 : i1 to i32
    %c0_i32_7 = arith.constant 0 : i32
    %16 = arith.cmpi ne, %15, %c0_i32_7 : i32
    scf.if %16 {
      %c0_9 = arith.constant 0 : index
      %c0_10 = arith.constant 0 : index
      %20 = vector.load %arg4[%c0_9, %c0_10] : memref<8x32xf32, #tpu.memory_space<vmem>>, vector<8x32xf32>
      %c0_11 = arith.constant 0 : index
      %c0_12 = arith.constant 0 : index
      %21 = vector.load %arg5[%c0_11, %c0_12] : memref<8x32xf32, #tpu.memory_space<vmem>>, vector<8x32xf32>
      %c0_13 = arith.constant 0 : index
      %c0_14 = arith.constant 0 : index
      %22 = vector.load %arg6[%c0_13, %c0_14] : memref<8x32xf32, #tpu.memory_space<vmem>>, vector<8x32xf32>
      %c0_15 = arith.constant 0 : index
      %c0_16 = arith.constant 0 : index
      %23 = vector.load %arg7[%c0_15, %c0_16] : memref<8x8xf32, #tpu.memory_space<vmem>>, vector<8x8xf32>
      %cst_17 = arith.constant 0.000000e+00 : f32
      %24 = vector.broadcast %cst_17 : f32 to vector<8x32xf32>
      %25 = arith.subf %24, %21 : vector<8x32xf32>
      %26 = math.exp %25 : vector<8x32xf32>
      %cst_18 = arith.constant 5.000000e-01 : f32
      %27 = vector.broadcast %cst_18 : f32 to vector<8x32xf32>
      %28 = arith.mulf %27, %21 : vector<8x32xf32>
      %29 = math.exp %28 : vector<8x32xf32>
      %30 = arith.mulf %22, %29 : vector<8x32xf32>
      %31 = arith.addf %30, %20 : vector<8x32xf32>
      %cst_19 = arith.constant 1.83787704 : f32
      %32 = vector.broadcast %cst_19 : f32 to vector<8x32xf32>
      %33 = arith.addf %32, %21 : vector<8x32xf32>
      %cst_20 = arith.constant -5.000000e-01 : f32
      %34 = vector.broadcast %cst_20 : f32 to vector<8x32xf32>
      %35 = arith.mulf %34, %33 : vector<8x32xf32>
      %36 = arith.subf %31, %20 : vector<8x32xf32>
      %37 = arith.mulf %36, %36 : vector<8x32xf32>
      %cst_21 = arith.constant 5.000000e-01 : f32
      %38 = vector.broadcast %cst_21 : f32 to vector<8x32xf32>
      %39 = arith.mulf %38, %37 : vector<8x32xf32>
      %40 = arith.mulf %39, %26 : vector<8x32xf32>
      %41 = arith.subf %35, %40 : vector<8x32xf32>
      %cst_22 = arith.constant dense<0.000000e+00> : vector<8xf32>
      %42 = vector.multi_reduction <add>, %41, %cst_22 [1] : vector<8x32xf32> to vector<8xf32>
      %43 = vector.shape_cast %42 : vector<8xf32> to vector<8x1xf32>
      %44 = arith.mulf %31, %31 : vector<8x32xf32>
      %cst_23 = arith.constant 1.83787704 : f32
      %45 = vector.broadcast %cst_23 : f32 to vector<8x32xf32>
      %46 = arith.addf %45, %44 : vector<8x32xf32>
      %cst_24 = arith.constant -5.000000e-01 : f32
      %47 = vector.broadcast %cst_24 : f32 to vector<8x32xf32>
      %48 = arith.mulf %47, %46 : vector<8x32xf32>
      %cst_25 = arith.constant dense<0.000000e+00> : vector<8xf32>
      %49 = vector.multi_reduction <add>, %48, %cst_25 [1] : vector<8x32xf32> to vector<8xf32>
      %50 = vector.shape_cast %49 : vector<8xf32> to vector<8x1xf32>
      %51 = arith.mulf %20, %26 : vector<8x32xf32>
      %52 = arith.mulf %31, %31 : vector<8x32xf32>
      %cst_26 = arith.constant dense<0.000000e+00> : vector<8x8xf32>
      %53 = tpu.matmul %52, %26, %cst_26 {dimension_numbers = #tpu.dot_dimension_numbers<[1], [1], [0], [0], [0, 0, 1, 0], [], []>} : vector<8x32xf32>, vector<8x32xf32>, vector<8x8xf32> -> vector<8x8xf32>
      %cst_27 = arith.constant dense<0.000000e+00> : vector<8x8xf32>
      %54 = tpu.matmul %31, %51, %cst_27 {dimension_numbers = #tpu.dot_dimension_numbers<[1], [1], [0], [0], [0, 0, 1, 0], [], []>} : vector<8x32xf32>, vector<8x32xf32>, vector<8x8xf32> -> vector<8x8xf32>
      %55 = arith.mulf %20, %51 : vector<8x32xf32>
      %cst_28 = arith.constant 1.83787704 : f32
      %56 = vector.broadcast %cst_28 : f32 to vector<8x32xf32>
      %57 = arith.addf %56, %21 : vector<8x32xf32>
      %58 = arith.addf %55, %57 : vector<8x32xf32>
      %cst_29 = arith.constant 1.000000e+00 : f32
      %59 = vector.broadcast %cst_29 : f32 to vector<1x32xf32>
      %cst_30 = arith.constant dense<0.000000e+00> : vector<1x8xf32>
      %60 = tpu.matmul %59, %58, %cst_30 {dimension_numbers = #tpu.dot_dimension_numbers<[1], [1], [0], [0], [0, 0, 1, 0], [], []>} : vector<1x32xf32>, vector<8x32xf32>, vector<1x8xf32> -> vector<1x8xf32>
      %cst_31 = arith.constant 2.000000e+00 : f32
      %61 = vector.broadcast %cst_31 : f32 to vector<8x8xf32>
      %62 = arith.mulf %61, %54 : vector<8x8xf32>
      %63 = arith.subf %53, %62 : vector<8x8xf32>
      %64 = vector.broadcast %60 : vector<1x8xf32> to vector<8x8xf32>
      %65 = arith.addf %63, %64 : vector<8x8xf32>
      %cst_32 = arith.constant -5.000000e-01 : f32
      %66 = vector.broadcast %cst_32 : f32 to vector<8x8xf32>
      %67 = arith.mulf %66, %65 : vector<8x8xf32>
      %cst_33 = arith.constant 3.200000e+01 : f32
      %68 = vector.broadcast %cst_33 : f32 to vector<8x8xf32>
      %69 = arith.mulf %68, %23 : vector<8x8xf32>
      %70 = arith.addf %67, %69 : vector<8x8xf32>
      %cst_34 = arith.constant dense<0xFF800000> : vector<8xf32>
      %71 = vector.multi_reduction <maximumf>, %70, %cst_34 [1] : vector<8x8xf32> to vector<8xf32>
      %72 = vector.shape_cast %71 : vector<8xf32> to vector<8x1xf32>
      %73 = vector.broadcast %72 : vector<8x1xf32> to vector<8x8xf32>
      %74 = arith.subf %70, %73 : vector<8x8xf32>
      %75 = math.exp %74 : vector<8x8xf32>
      %cst_35 = arith.constant dense<0.000000e+00> : vector<8xf32>
      %76 = vector.multi_reduction <add>, %75, %cst_35 [1] : vector<8x8xf32> to vector<8xf32>
      %77 = vector.shape_cast %76 : vector<8xf32> to vector<8x1xf32>
      %78 = math.log %77 : vector<8x1xf32>
      %79 = arith.addf %72, %78 : vector<8x1xf32>
      %80 = vector.shape_cast %21 : vector<8x32xf32> to vector<1x8x32xf32>
      %cst_36 = arith.constant 1.83787704 : f32
      %81 = vector.broadcast %cst_36 : f32 to vector<1x8x32xf32>
      %82 = arith.addf %81, %80 : vector<1x8x32xf32>
      %cst_37 = arith.constant -5.000000e-01 : f32
      %83 = vector.broadcast %cst_37 : f32 to vector<1x8x32xf32>
      %84 = arith.mulf %83, %82 : vector<1x8x32xf32>
      %85 = vector.shape_cast %31 : vector<8x32xf32> to vector<8x1x32xf32>
      %86 = vector.shape_cast %20 : vector<8x32xf32> to vector<1x8x32xf32>
      %87 = vector.broadcast %85 : vector<8x1x32xf32> to vector<8x8x32xf32>
      %88 = vector.broadcast %86 : vector<1x8x32xf32> to vector<8x8x32xf32>
      %89 = arith.subf %87, %88 : vector<8x8x32xf32>
      %90 = arith.mulf %89, %89 : vector<8x8x32xf32>
      %cst_38 = arith.constant 5.000000e-01 : f32
      %91 = vector.broadcast %cst_38 : f32 to vector<8x8x32xf32>
      %92 = arith.mulf %91, %90 : vector<8x8x32xf32>
      %93 = vector.shape_cast %26 : vector<8x32xf32> to vector<1x8x32xf32>
      %94 = vector.broadcast %93 : vector<1x8x32xf32> to vector<8x8x32xf32>
      %95 = arith.mulf %92, %94 : vector<8x8x32xf32>
      %96 = vector.broadcast %84 : vector<1x8x32xf32> to vector<8x8x32xf32>
      %97 = arith.subf %96, %95 : vector<8x8x32xf32>
      %98 = vector.shape_cast %23 : vector<8x8xf32> to vector<8x8x1xf32>
      %99 = vector.broadcast %98 : vector<8x8x1xf32> to vector<8x8x32xf32>
      %100 = arith.addf %97, %99 : vector<8x8x32xf32>
      %cst_39 = arith.constant dense<0xFF800000> : vector<8x32xf32>
      %101 = vector.multi_reduction <maximumf>, %100, %cst_39 [1] : vector<8x8x32xf32> to vector<8x32xf32>
      %102 = vector.shape_cast %101 : vector<8x32xf32> to vector<8x1x32xf32>
      %103 = vector.shape_cast %102 : vector<8x1x32xf32> to vector<8x32xf32>
      %104 = vector.broadcast %102 : vector<8x1x32xf32> to vector<8x8x32xf32>
      %105 = arith.subf %100, %104 : vector<8x8x32xf32>
      %106 = math.exp %105 : vector<8x8x32xf32>
      %cst_40 = arith.constant dense<0.000000e+00> : vector<8x32xf32>
      %107 = vector.multi_reduction <add>, %106, %cst_40 [1] : vector<8x8x32xf32> to vector<8x32xf32>
      %108 = math.log %107 : vector<8x32xf32>
      %109 = arith.addf %103, %108 : vector<8x32xf32>
      %cst_41 = arith.constant dense<0.000000e+00> : vector<8xf32>
      %110 = vector.multi_reduction <add>, %109, %cst_41 [1] : vector<8x32xf32> to vector<8xf32>
      %111 = vector.shape_cast %110 : vector<8xf32> to vector<8x1xf32>
      %112 = arith.subf %43, %79 : vector<8x1xf32>
      %113 = vector.shape_cast %112 : vector<8x1xf32> to vector<1x8x1xf32>
      %cst_42 = arith.constant dense<0.000000e+00> : vector<1xf32>
      %114 = vector.multi_reduction <add>, %113, %cst_42 [1, 2] : vector<1x8x1xf32> to vector<1xf32>
      %115 = vector.shape_cast %114 : vector<1xf32> to vector<1x1x1xf32>
      %116 = vector.extract %115[0, 0, 0] : f32 from vector<1x1x1xf32>
      %cst_43 = arith.constant 8.000000e+00 : f32
      %117 = arith.divf %116, %cst_43 : f32
      %c0_44 = arith.constant 0 : index
      %118 = memref.load %arg10[%c0_44] : memref<3xf32, #tpu.memory_space<smem>>
      memref.store %117, %arg10[%c0_44] : memref<3xf32, #tpu.memory_space<smem>>
      %119 = arith.subf %79, %111 : vector<8x1xf32>
      %120 = vector.shape_cast %119 : vector<8x1xf32> to vector<1x8x1xf32>
      %cst_45 = arith.constant dense<0.000000e+00> : vector<1xf32>
      %121 = vector.multi_reduction <add>, %120, %cst_45 [1, 2] : vector<1x8x1xf32> to vector<1xf32>
      %122 = vector.shape_cast %121 : vector<1xf32> to vector<1x1x1xf32>
      %123 = vector.extract %122[0, 0, 0] : f32 from vector<1x1x1xf32>
      %cst_46 = arith.constant 8.000000e+00 : f32
      %124 = arith.divf %123, %cst_46 : f32
      %c1 = arith.constant 1 : index
      %125 = memref.load %arg10[%c1] : memref<3xf32, #tpu.memory_space<smem>>
      memref.store %124, %arg10[%c1] : memref<3xf32, #tpu.memory_space<smem>>
      %126 = arith.subf %111, %50 : vector<8x1xf32>
      %127 = vector.shape_cast %126 : vector<8x1xf32> to vector<1x8x1xf32>
      %cst_47 = arith.constant dense<0.000000e+00> : vector<1xf32>
      %128 = vector.multi_reduction <add>, %127, %cst_47 [1, 2] : vector<1x8x1xf32> to vector<1xf32>
      %129 = vector.shape_cast %128 : vector<1xf32> to vector<1x1x1xf32>
      %130 = vector.extract %129[0, 0, 0] : f32 from vector<1x1x1xf32>
      %cst_48 = arith.constant 8.000000e+00 : f32
      %131 = arith.divf %130, %cst_48 : f32
      %c2 = arith.constant 2 : index
      %132 = memref.load %arg10[%c2] : memref<3xf32, #tpu.memory_space<smem>>
      memref.store %131, %arg10[%c2] : memref<3xf32, #tpu.memory_space<smem>>
    } else {
    }
    %c1_i32 = arith.constant 1 : i32
    %17 = arith.cmpi eq, %arg0, %c1_i32 : i32
    %18 = arith.extui %17 : i1 to i32
    %c0_i32_8 = arith.constant 0 : i32
    %19 = arith.cmpi ne, %18, %c0_i32_8 : i32
    scf.if %19 {
      %c0_9 = arith.constant 0 : index
      %20 = memref.load %arg9[%c0_9] : memref<1xf32, #tpu.memory_space<smem>>
      %c0_10 = arith.constant 0 : index
      %21 = memref.load %arg10[%c0_10] : memref<3xf32, #tpu.memory_space<smem>>
      %c1 = arith.constant 1 : index
      %22 = memref.load %arg10[%c1] : memref<3xf32, #tpu.memory_space<smem>>
      %c2 = arith.constant 2 : index
      %23 = memref.load %arg10[%c2] : memref<3xf32, #tpu.memory_space<smem>>
      %c0_11 = arith.constant 0 : index
      %24 = memref.load %arg1[%c0_11] : memref<4xf32, #tpu.memory_space<smem>>
      %c1_12 = arith.constant 1 : index
      %25 = memref.load %arg1[%c1_12] : memref<4xf32, #tpu.memory_space<smem>>
      %c2_13 = arith.constant 2 : index
      %26 = memref.load %arg1[%c2_13] : memref<4xf32, #tpu.memory_space<smem>>
      %c3 = arith.constant 3 : index
      %27 = memref.load %arg1[%c3] : memref<4xf32, #tpu.memory_space<smem>>
      %cst_14 = arith.constant 8.000000e+00 : f32
      %28 = arith.divf %20, %cst_14 : f32
      %29 = arith.mulf %24, %21 : f32
      %30 = arith.addf %28, %29 : f32
      %31 = arith.mulf %25, %22 : f32
      %32 = arith.mulf %27, %26 : f32
      %33 = arith.mulf %32, %23 : f32
      %34 = arith.addf %31, %33 : f32
      %cst_15 = arith.constant 1.000000e+00 : f32
      %35 = arith.mulf %cst_15, %34 : f32
      %36 = arith.addf %30, %35 : f32
      %c0_16 = arith.constant 0 : index
      %37 = memref.load %arg8[%c0_16] : memref<6xf32, #tpu.memory_space<smem>>
      memref.store %36, %arg8[%c0_16] : memref<6xf32, #tpu.memory_space<smem>>
      %c1_17 = arith.constant 1 : index
      %38 = memref.load %arg8[%c1_17] : memref<6xf32, #tpu.memory_space<smem>>
      memref.store %20, %arg8[%c1_17] : memref<6xf32, #tpu.memory_space<smem>>
      %c2_18 = arith.constant 2 : index
      %39 = memref.load %arg8[%c2_18] : memref<6xf32, #tpu.memory_space<smem>>
      memref.store %23, %arg8[%c2_18] : memref<6xf32, #tpu.memory_space<smem>>
      %cst_19 = arith.constant 0.000000e+00 : f32
      %c3_20 = arith.constant 3 : index
      %40 = memref.load %arg8[%c3_20] : memref<6xf32, #tpu.memory_space<smem>>
      memref.store %cst_19, %arg8[%c3_20] : memref<6xf32, #tpu.memory_space<smem>>
      %c4 = arith.constant 4 : index
      %41 = memref.load %arg8[%c4] : memref<6xf32, #tpu.memory_space<smem>>
      memref.store %22, %arg8[%c4] : memref<6xf32, #tpu.memory_space<smem>>
      %c5 = arith.constant 5 : index
      %42 = memref.load %arg8[%c5] : memref<6xf32, #tpu.memory_space<smem>>
      memref.store %21, %arg8[%c5] : memref<6xf32, #tpu.memory_space<smem>>
    } else {
    }
    return
  }
  func.func @transform_0(%arg0: i32, %arg1: memref<4xf32, #tpu.memory_space<smem>>) -> (i32, i32) {
    %c0_i32 = arith.constant 0 : i32
    %c0_i32_0 = arith.constant 0 : i32
    return %c0_i32, %arg0 : i32, i32
  }
  func.func @transform_1(%arg0: i32, %arg1: memref<4xf32, #tpu.memory_space<smem>>) -> (i32, i32) {
    %c0_i32 = arith.constant 0 : i32
    %c0_i32_0 = arith.constant 0 : i32
    return %c0_i32, %arg0 : i32, i32
  }
  func.func @transform_2(%arg0: i32, %arg1: memref<4xf32, #tpu.memory_space<smem>>) -> (i32, i32) {
    %c0_i32 = arith.constant 0 : i32
    %c0_i32_0 = arith.constant 0 : i32
    %c0_i32_1 = arith.constant 0 : i32
    return %c0_i32, %c0_i32_0 : i32, i32
  }
  func.func @transform_3(%arg0: i32, %arg1: memref<4xf32, #tpu.memory_space<smem>>) -> (i32, i32) {
    %c0_i32 = arith.constant 0 : i32
    %c0_i32_0 = arith.constant 0 : i32
    %c0_i32_1 = arith.constant 0 : i32
    return %c0_i32, %c0_i32_0 : i32, i32
  }
  func.func @transform_4(%arg0: i32, %arg1: memref<4xf32, #tpu.memory_space<smem>>) -> (i32, i32) {
    %c0_i32 = arith.constant 0 : i32
    %c0_i32_0 = arith.constant 0 : i32
    %c0_i32_1 = arith.constant 0 : i32
    return %c0_i32, %c0_i32_0 : i32, i32
  }
  func.func @transform_5(%arg0: i32, %arg1: memref<4xf32, #tpu.memory_space<smem>>) -> (i32, i32) {
    %c0_i32 = arith.constant 0 : i32
    %c0_i32_0 = arith.constant 0 : i32
    %c0_i32_1 = arith.constant 0 : i32
    return %c0_i32, %c0_i32_0 : i32, i32
  }
  func.func @transform_6(%arg0: i32, %arg1: memref<4xf32, #tpu.memory_space<smem>>) -> i32 {
    %c0_i32 = arith.constant 0 : i32
    %c0_i32_0 = arith.constant 0 : i32
    return %c0_i32 : i32
  }
}

</mosaic_0001>

<bundles_post_ra>
// kernel: tpu_custom_call.1
= control target key start
LH: loop header
LB: loop body
LE: loop exit
PB: predicated region body
PF: predicated region fallthrough
CT: control target
= control target key end

     0   :  { %s2172_s0 = inlined_call_operand.hbm [shape: f32[4], index: 0, kind: input, shape index: {}]   ;;  %s2173_s1 = inlined_call_operand.hbm [shape: f32[8,4096], index: 1, kind: input, shape index: {}]   ;;  %s2174_s2 = inlined_call_operand.hbm [shape: f32[8,4096], index: 2, kind: input, shape index: {}]   ;;  %s2175_s3 = inlined_call_operand.vmem [shape: f32[8,32], index: 3, kind: input, shape index: {}]   ;;  %s2176_s4 = inlined_call_operand.hbm [shape: f32[8,32], index: 4, kind: input, shape index: {}]   ;;  %s2177_s5 = inlined_call_operand.vmem [shape: f32[8,32], index: 5, kind: input, shape index: {}]   ;;  %s2178_s6 = inlined_call_operand.hbm [shape: f32[8,8], index: 6, kind: input, shape index: {}]   ;;  %s2179_s7 = inlined_call_operand.hbm [shape: f32[6], index: 7, kind: output, shape index: {}]  }
   0x1   :  { %2183 = sst [smem:[#allocation21_spill]] %s2173_s1  ;;  %s1464_s26 = scalar_lea.hbm %s2172_s0, 16 }
   0x2   :  { %p1465_p0 = scmp.ne.s32.totalorder %s2172_s0, %s1464_s26  ;;  %p1468_p1 = scmp.lt.u32.totalorder %s1464_s26, %s2172_s0 }
   0x4   :  { %p1470_p2 = pnand %p1468_p1, %p1465_p0 }
   0x6   :  { %1473 = shalt.err (!%p1470_p2)  }
   0x7   :  { %s1656_s8 = smov [#allocation5]  }
   0x8   :  { %13 = dma.hbm_to_smem %s2172_s0, 16, %s1656_s8, [#allocation4] }
   0x9   :  { %1618 = dma.done.wait [#allocation4], 16 }
   0xa   :  { %1619 = vsyncadd [#allocation4], 4294967280 }
   0xb   :  { %15 = sfence }
   0xc   :  { %16 = vsyncpa [#allocation7], 0 }
   0xd   :  { %18 = vsyncpa [#allocation7 + $0x1], 0 }
   0xe   :  { %19 = vsyncpa [#allocation10], 0 }
   0xf   :  { %21 = vsyncpa [#allocation10 + $0x1], 0 }
  0x10   :  { %22 = vsyncpa [#allocation13], 0 }
  0x11   :  { %23 = vsyncpa [#allocation8], 0  ;;  %s1719_s11 = smov 0   ;;  %s1721_s12 = smov 0  }
  0x12   :  { %s1723_s13 = smov 0   ;;  %s1725_s14 = smov 0  }
  0x13 LB: > { %s1738_s0 = sadd.s32 4294967295, %s1654_s14   ;;  %p49_p3 = scmp.ne.s32.totalorder %s1646_s12, %s1642_s11  ;;  %s1654_s14 = sphi %s1725_s14, %s2200_s14   ;;  %s1650_s13 = sphi %s1723_s13, %s2199_s13   ;;  %s1646_s12 = sphi %s1721_s12, %s2198_s12   ;;  %s1642_s11 = sphi %s1719_s11, %s2197_s11  }
  0x14   : > { %p2180_p4 = scmp.eq.s32.totalorder %s1738_s0, 0  ;;  %p1271_p5 = scmp.ge.s32.totalorder %s1654_s14, 1 }
  0x15   : > { %p191_p6 = scmp.lt.s32.totalorder %s1654_s14, 3  ;;  %s1657_s17 = smov [#allocation11]  }
  0x16   : > { %p1747_p8 = por %p2180_p4, %p49_p3  ;;  %s207_s18 = sshll.u32 %s1657_s17, 4  ;;  %s208_s18 = int_to_ptr.vmem [resolvable:$true] %s207_s18 }
  0x17   : > { %p1751_p9 = pnand %p1271_p5, %p191_p6  ;;  %s1658_s19 = smov [#allocation12]  }
  0x18   : > { %s2184_s15 = scalar_select %p1747_p8, 1, 0 }
  0x19   : > { %s2185_s16 = scalar_select %p1751_p9, 1, 0 }
  0x1a   : > { %p1360_p10 = pneg %p1751_p9  ;;  %s221_s20 = sshll.u32 %s1658_s19, 4  ;;  %s1763_s20 = int_to_ptr.vmem [resolvable:$true] %s221_s20 }
  0x1b   : > { %s1766_s22 = sadd.s32 1, %s1654_s14   ;;  %s1474_s26 = scalar_lea.hbm %s2176_s4, 128 }
  0x1c   : > { %p1759_p11 = pnand %p1360_p10, %p2180_p4  ;;  %s33_s23 = ssub.s32 %s1654_s14, %s1766_s22 }
  0x1d   : > { %p1475_p12 = scmp.ne.s32.totalorder %s2176_s4, %s1474_s26  ;;  %p1481_p2 = scmp.lt.u32.totalorder %s1474_s26, %s2176_s4 }
  0x1e   : > { %p1476_p13 = pneg %p1759_p11 }
  0x20   : > { %p1477_p0 = pnand %p1476_p13, %p1475_p12 }
  0x22   : > { %p1478_p1 = pneg %p1477_p0 }
  0x24   : > { %p1483_p3 = pnand %p1481_p2, %p1478_p1 }
  0x26   : > { %1486 = shalt.err (!%p1483_p3)
}
  0x27   : > { %s1487_s8 = scalar_lea.vmem %s208_s18, 128  ;;  %p1495_p7 = scmp.lt.s32.totalorder %s208_s18, %s208_s18 }
  0x28   : > { %p1488_p5 = scmp.ne.s32.totalorder %s208_s18, %s1487_s8  ;;  %p1496_p4 = scmp.lt.s32.totalorder %s1487_s8, %s1487_s8 }
  0x2a   : > { %p1490_p6 = pnand %p1488_p5, %p1476_p13  ;;  %p1497_p8 = por %p1496_p4, %p1495_p7 }
  0x2c   : > { %p1491_p10 = pneg %p1490_p6 }
  0x2e   : > { %p1498_p9 = pnand %p1497_p8, %p1491_p10 }
  0x30   : > { %1501 = shalt.err (!%p1498_p9)
}
  0x31   : > { %1363 = dma.hbm_to_vmem [thread:$0]  (!%p1759_p11), %s2176_s4, 128, %s208_s18, [#allocation10]  }
  0x32   : > { %s1502_s19 = scalar_lea.hbm %s2178_s6, 128 }
  0x33   : > { %p1503_p12 = scmp.ne.s32.totalorder %s2178_s6, %s1502_s19  ;;  %p1509_p8 = scmp.lt.u32.totalorder %s1502_s19, %s2178_s6 }
  0x35   : > { %p1505_p4 = pnand %p1503_p12, %p1476_p13 }
  0x37   : > { %p1506_p7 = pneg %p1505_p4 }
  0x39   : > { %p1511_p9 = pnand %p1509_p8, %p1506_p7 }
  0x3b   : > { %1514 = shalt.err (!%p1511_p9)
}
  0x3c   : > { %s1515_s18 = scalar_lea.vmem %s1763_s20, 128  ;;  %p1523_p3 = scmp.lt.s32.totalorder %s1763_s20, %s1763_s20 }
  0x3d   : > { %p1516_p0 = scmp.ne.s32.totalorder %s1763_s20, %s1515_s18  ;;  %p1524_p5 = scmp.lt.s32.totalorder %s1515_s18, %s1515_s18 }
  0x3f   : > { %p1518_p1 = pnand %p1516_p0, %p1476_p13  ;;  %p1525_p6 = por %p1524_p5, %p1523_p3 }
  0x41   : > { %p1519_p2 = pneg %p1518_p1 }
  0x43   : > { %p1526_p10 = pnand %p1525_p6, %p1519_p2 }
  0x45   : > { %1529 = shalt.err (!%p1526_p10)
}
  0x46   : > { %1366 = dma.hbm_to_vmem [thread:$0]  (!%p1759_p11), %s2178_s6, 128, %s1763_s20, [#allocation13]  }
  0x47   : > { %p34_p13 = scmp.eq.s32.totalorder %s33_s23, 0  ;;  %s36_s30 = sadd.s32 1, %s1650_s13 }
  0x48   : > { %p43_p12 = scmp.ne.s32.totalorder %s1650_s13, %s1646_s12  ;;  %p44_p4 = scmp.eq.s32.totalorder %s1654_s14, 0 }
  0x49   : > { %s1825_s21 = scalar_select %p34_p13, %s1650_s13, %s36_s30  }
  0x4a   : > { %p45_p7 = por %p44_p4, %p43_p12  ;;  %p1376_p8 = scmp.lt.s32.totalorder %s1654_s14, 2 }
  0x4b   : > { %s232_s8 = sand.u32 1, %s1650_s13   ;;  %s1304_s9 = sshll.u32 %s1654_s14, 11 }
  0x4c   : > { %s1830_s10 = sshll.u32 %s232_s8, 7  ;;  %s2187_s1 = sld [smem:[#allocation21_spill]] }
  0x4d   : > { %s236_s20 = scalar_lea.vmem [#allocation6], %s1830_s10  ;;  %p1838_p11 = pnand %p1376_p8, %p45_p7 }
  0x4e   : > { %s244_s23 = sshll.u32 %s236_s20, 4  ;;  %s1847_s27 = scalar_lea.hbm %s2174_s2, %s1304_s9  ;;  %s1842_s23 = int_to_ptr.vmem [resolvable:$true] %s244_s23 }
  0x4f   : > { %s233_s18 = scalar_lea.sflag [#allocation7], %s232_s8  ;;  %p1532_p0 = pneg %p1838_p11 }
  0x52   : > { %s1835_s19 = scalar_lea.hbm %s2187_s1, %s1304_s9  ;;  %s1535_s11 = scalar_lea.hbm %s2187_s1, 4096 }
  0x53   : > { %s1530_s28 = scalar_lea.hbm %s1835_s19, 2048  ;;  %p1536_p3 = scmp.lt.u32.totalorder %s1835_s19, %s2187_s1 }
  0x54   : > { %p1531_p9 = scmp.ne.s32.totalorder %s1835_s19, %s1530_s28  ;;  %p1537_p5 = scmp.lt.u32.totalorder %s1535_s11, %s1530_s28 }
  0x55   : > { %p1539_p10 = scmp.lt.u32.totalorder %s1530_s28, %s1835_s19 }
  0x56   : > { %p1533_p1 = pnand %p1532_p0, %p1531_p9  ;;  %p1538_p6 = por %p1537_p5, %p1536_p3 }
  0x58   : > { %p1534_p2 = pneg %p1533_p1  ;;  %p1540_p13 = por %p1539_p10, %p1538_p6 }
  0x5a   : > { %p1541_p12 = pnand %p1540_p13, %p1534_p2 }
  0x5c   : > { %1544 = shalt.err (!%p1541_p12)
}
  0x5d   : > { %s1545_s8 = scalar_lea.vmem %s1842_s23, 2048  ;;  %s1659_s9 = smov [#allocation6]  }
  0x5e   : > { %p1546_p4 = scmp.ne.s32.totalorder %s1842_s23, %s1545_s8  ;;  %s1550_s25 = sshll.u32 %s1659_s9, 4  ;;  %s1551_s25 = int_to_ptr.vmem [resolvable:$false] %s1550_s25 }
  0x5f   : > { %s1552_s26 = scalar_lea.vmem %s1551_s25, 4096  ;;  %p1553_p9 = scmp.lt.s32.totalorder %s1842_s23, %s1551_s25 }
  0x60   : > { %p1548_p7 = pnand %p1546_p4, %p1532_p0  ;;  %p1554_p1 = scmp.lt.s32.totalorder %s1552_s26, %s1545_s8 }
  0x62   : > { %p1549_p8 = pneg %p1548_p7  ;;  %p1555_p3 = por %p1554_p1, %p1553_p9 }
  0x64   : > { %p1556_p5 = pnand %p1555_p3, %p1549_p8 }
  0x66   : > { %1559 = shalt.err (!%p1556_p5)
}
  0x67   : > { %1370 = dma.hbm_to_vmem [thread:$0]  (!%p1838_p11), %s1835_s19, 2048, %s1842_s23, %s233_s18  }
  0x68   : > { %s251_s28 = sand.u32 1, %s1654_s14   ;;  %s255_s29 = scalar_lea.vmem [#allocation9], %s1830_s10 }
  0x69   : > { %s263_s30 = sshll.u32 %s255_s29, 4  ;;  %s252_s11 = scalar_lea.sflag [#allocation10], %s251_s28  ;;  %s264_s30 = int_to_ptr.vmem [resolvable:$true] %s263_s30 }
  0x6a   : > { %s1560_s17 = scalar_lea.hbm %s1847_s27, 2048  ;;  %s1565_s9 = scalar_lea.hbm %s2174_s2, 4096 }
  0x6b   : > { %p1561_p2 = scmp.ne.s32.totalorder %s1847_s27, %s1560_s17  ;;  %p1566_p13 = scmp.lt.u32.totalorder %s1847_s27, %s2174_s2 }
  0x6c   : > { %p1567_p12 = scmp.lt.u32.totalorder %s1565_s9, %s1560_s17  ;;  %p1569_p7 = scmp.lt.u32.totalorder %s1560_s17, %s1847_s27 }
  0x6d   : > { %p1563_p6 = pnand %p1561_p2, %p1532_p0 }
  0x6e   : > { %p1568_p4 = por %p1567_p12, %p1566_p13 }
  0x6f   : > { %p1564_p10 = pneg %p1563_p6 }
  0x70   : > { %p1570_p8 = por %p1569_p7, %p1568_p4 }
  0x72   : > { %p1571_p9 = pnand %p1570_p8, %p1564_p10 }
  0x74   : > { %1574 = shalt.err (!%p1571_p9)
}
  0x75   : > { %s1575_s14 = scalar_lea.vmem %s264_s30, 2048  ;;  %s1660_s10 = smov [#allocation9]  }
  0x76   : > { %p1576_p1 = scmp.ne.s32.totalorder %s264_s30, %s1575_s14  ;;  %s1580_s19 = sshll.u32 %s1660_s10, 4  ;;  %s1581_s19 = int_to_ptr.vmem [resolvable:$false] %s1580_s19 }
  0x77   : > { %s1582_s23 = scalar_lea.vmem %s1581_s19, 4096  ;;  %p1583_p2 = scmp.lt.s32.totalorder %s264_s30, %s1581_s19 }
  0x78   : > { %p1578_p3 = pnand %p1576_p1, %p1532_p0  ;;  %p1584_p6 = scmp.lt.s32.totalorder %s1582_s23, %s1575_s14 }
  0x7a   : > { %p1579_p5 = pneg %p1578_p3  ;;  %p1585_p12 = por %p1584_p6, %p1583_p2 }
  0x7c   : > { %p1586_p13 = pnand %p1585_p12, %p1579_p5 }
  0x7e   : > { %1589 = shalt.err (!%p1586_p13)
}
  0x7f   : > { %1373 = dma.hbm_to_vmem [thread:$0]  (!%p1838_p11), %s1847_s27, 2048, %s264_s30, %s252_s11  }
  0x80   : > { %p2189_p10 = scmp.ne.s32.totalorder %s2185_s16, 0 }
  0x81   : > { %s274_s18 = sand.u32 (!%p2189_p10), 1, %s1646_s12   ;;  %p2190_p0 = scmp.ne.s32.totalorder (!%p2189_p10), %s2184_s15, 0 }
  0x82   : > { %272 = sbr.rel (%p2189_p10) target bundleno = 961 (0x3c1), region = 44  ;;  %s1282_s28 = sshll.u32 (!%p2189_p10), %s274_s18, 7 }
  0x83   : > { %s275_s29 = scalar_lea.sflag (!%p2189_p10), [#allocation7], %s274_s18  ;;  %s1898_s17 = scalar_lea.vmem (!%p2189_p10), [#allocation6], %s1282_s28 }
  0x89   : > { %1621 = dma.done.wait (%p2190_p0), %s275_s29, 2048  }
  0x8a   : > { %1623 = vsyncadd (%p2190_p0), %s275_s29, 4294965248  ;;  %s283_s24 = sand.u32 1, %s1738_s0   ;;  %s1905_s27 = scalar_lea.vmem [#allocation9], %s1282_s28 }
  0x8b   : > { %s284_s20 = scalar_lea.sflag [#allocation10], %s283_s24 }
  0x8c   : > { %1625 = dma.done.wait (%p2190_p0), %s284_s20, 2048  }
  0x8d   : > { %1627 = vsyncadd (%p2190_p0), %s284_s20, 4294965248  ;;  %p2191_p11 = scmp.eq.s32.totalorder %s1738_s0, 0 }
  0x8f   : > { %1629 = dma.done.wait (%p2191_p11), [#allocation10], 128   ;;  %p2192_p4 = pmov %p2191_p11 }
  0x91   : > { %1631 = vsyncadd (%p2192_p4), [#allocation10], 4294967168  ;;  %p2193_p7 = pmov %p2192_p4 }
  0x92   : > { %p2194_p8 = pmov %p2192_p4 }
  0x93   : > { %1633 = dma.done.wait (%p2193_p7), [#allocation13], 128  }
  0x94   : > { %1635 = vsyncadd (%p2194_p8), [#allocation13], 4294967168  ;;  %v332_v0 = vld [vmem:[%s1905_s27] sm:$0xff]  ;;  %v333_v1 = vld [vmem:[%s1905_s27 + $0x8] sm:$0xff]  ;;  %s1661_s15 = smov 0.0   ;;  %p2195_p9 = pmov %p2192_p4 }
  0x95   : > { %v334_v2 = vld [vmem:[%s1905_s27 + $0x10] sm:$0xff]  ;;  %v348_v3 = vld [vmem:[%s1898_s17] sm:$0xff]  ;;  %v349_v4 = vld [vmem:[%s1898_s17 + $0x8] sm:$0xff]  ;;  %p2196_p1 = scmp.ne.s32.totalorder %s1738_s0, 0 }
  0x96   : > { %v350_v5 = vld [vmem:[%s1898_s17 + $0x10] sm:$0xff]  ;;  %v364_v6 = vsub.f32 %v332_v0, %v348_v3  ;;  %v365_v7 = vsub.f32 %v333_v1, %v349_v4  ;;  %v335_v8 = vld [vmem:[%s1905_s27 + $0x18] sm:$0xff]  ;;  %v336_v11 = vld [vmem:[%s1905_s27 + $0x20] sm:$0xff]  ;;  %1348 = sst [smem:[#allocation2]] (%p2195_p9), %s1661_s15  ;;  %vm1663_vm0 = vmmov (!%p2196_p1), 0   ;;  %vm446_vm1 = vcmask (!%p2196_p1), 261120  }
  0x97   : > { %v351_v9 = vld [vmem:[%s1898_s17 + $0x18] sm:$0xff]  ;;  %v366_v10 = vsub.f32 %v334_v2, %v350_v5  ;;  %v352_v12 = vld [vmem:[%s1898_s17 + $0x20] sm:$0xff]  ;;  %v337_v16 = vld [vmem:[%s1905_s27 + $0x28] sm:$0xff]  ;;  %s380_s16 = sld [smem:[#allocation2]]  ;;  %vm697_vm2 = vcmask (!%p2196_p1), 64512   ;;  %vm1071_vm3 = vcmask (!%p2196_p1), 1041409  }
  0x98   : > { %v367_v13 = vsub.f32 %v335_v8, %v351_v9  ;;  %v381_v14 = vmul.f32 %v364_v6, %v364_v6  ;;  %v382_v15 = vmul.f32 %v365_v7, %v365_v7  ;;  %v353_v17 = vld [vmem:[%s1898_s17 + $0x28] sm:$0xff]  ;;  %v368_v18 = vsub.f32 %v336_v11, %v352_v12  ;;  %v338_v20 = vld [vmem:[%s1905_s27 + $0x30] sm:$0xff]  ;;  %v339_v25 = vld [vmem:[%s1905_s27 + $0x38] sm:$0xff] }
  0x99   : > { %v383_v19 = vmul.f32 %v366_v10, %v366_v10  ;;  %v354_v21 = vld [vmem:[%s1898_s17 + $0x30] sm:$0xff]  ;;  %v369_v22 = vsub.f32 %v337_v16, %v353_v17  ;;  %v355_v26 = vld [vmem:[%s1898_s17 + $0x38] sm:$0xff]  ;;  %v340_v30 = vld [vmem:[%s1905_s27 + $0x40] sm:$0xff]  ;;  %vm1073_vm4 = vcmask (!%p2196_p1), 1042434   ;;  %vm1075_vm5 = vcmask (!%p2196_p1), 1043459  }
  0x9a   : > { %v384_v23 = vmul.f32 %v367_v13, %v367_v13  ;;  %v397_v24 = vadd.f32 %v382_v15, %v381_v14  ;;  %v370_v27 = vsub.f32 %v338_v20, %v354_v21  ;;  %v385_v28 = vmul.f32 %v368_v18, %v368_v18  ;;  %v356_v31 = vld [vmem:[%s1898_s17 + $0x40] sm:$0xff]  ;;  %v341_v35 = vld [vmem:[%s1905_s27 + $0x48] sm:$0xff]  ;;  %v342_v40 = vld [vmem:[%s1905_s27 + $0x50] sm:$0xff] }
  0x9b   : > { %v371_v32 = vsub.f32 %v339_v25, %v355_v26  ;;  %v386_v33 = vmul.f32 %v369_v22, %v369_v22  ;;  %v357_v36 = vld [vmem:[%s1898_s17 + $0x48] sm:$0xff]  ;;  %v372_v37 = vsub.f32 %v340_v30, %v356_v31  ;;  %v358_v41 = vld [vmem:[%s1898_s17 + $0x50] sm:$0xff]  ;;  %v343_v45 = vld [vmem:[%s1905_s27 + $0x58] sm:$0xff]  ;;  %vm1077_vm6 = vcmask (!%p2196_p1), 1044484  }
  0x9c   : > { %v398_v29 = vadd.f32 %v397_v24, %v383_v19  ;;  %v387_v38 = vmul.f32 %v370_v27, %v370_v27  ;;  %v373_v42 = vsub.f32 %v341_v35, %v357_v36  ;;  %v359_v46 = vld [vmem:[%s1898_s17 + $0x58] sm:$0xff]  ;;  %v374_v47 = vsub.f32 %v342_v40, %v358_v41  ;;  %v344_v50 = vld [vmem:[%s1905_s27 + $0x60] sm:$0xff]  ;;  %v345_v55 = vld [vmem:[%s1905_s27 + $0x68] sm:$0xff] }
  0x9d   : > { %v388_v43 = vmul.f32 %v371_v32, %v371_v32  ;;  %v389_v48 = vmul.f32 %v372_v37, %v372_v37  ;;  %v360_v51 = vld [vmem:[%s1898_s17 + $0x60] sm:$0xff]  ;;  %v375_v52 = vsub.f32 %v343_v45, %v359_v46  ;;  %v361_v56 = vld [vmem:[%s1898_s17 + $0x68] sm:$0xff]  ;;  %v346_v60 = vld [vmem:[%s1905_s27 + $0x70] sm:$0xff]  ;;  %v1662_v24 = vmov (!%p2196_p1), 0.0  }
  0x9e   : > { %v399_v34 = vadd.f32 %v398_v29, %v384_v23  ;;  %v390_v53 = vmul.f32 %v373_v42, %v373_v42  ;;  %v376_v57 = vsub.f32 %v344_v50, %v360_v51  ;;  %v391_v58 = vmul.f32 %v374_v47, %v374_v47  ;;  %v362_v61 = vld [vmem:[%s1898_s17 + $0x70] sm:$0xff]  ;;  %v347_v1 = vld [vmem:[%s1905_s27 + $0x78] sm:$0xff]  ;;  %v428_v22 = vld [vmem:[#allocation11] sm:$0xff] (!%p2196_p1)  ;;  %1312 = vmatprep.subr.mxu0 (!%p2196_p1), %v1662_v24 }
  0x9f   : > { %v377_v62 = vsub.f32 %v345_v55, %v361_v56  ;;  %v392_v63 = vmul.f32 %v375_v52, %v375_v52  ;;  %v363_v2 = vld [vmem:[%s1898_s17 + $0x78] sm:$0xff]  ;;  %v378_v3 = vsub.f32 %v346_v60, %v362_v61  ;;  %v689_v23 = vlaneseq (!%p2196_p1)  ;;  %1317 = vmatprep.subr.mxu1 (!%p2196_p1), %v1662_v24  ;;  %1319 = vmatprep.mubr.msk.f32.mxu1 (!%p2196_p1), %vm1663_vm0, %v1662_v24  ;;  %v430_v30 = vld [vmem:[#allocation12] sm:$0xff] (!%p2196_p1)  ;;  %v429_v46 = vld [vmem:[%s2177_s5] sm:$0xff] (!%p2196_p1) }
  0xa0   : > { %v400_v39 = vadd.f32 %v399_v34, %v385_v28  ;;  %v393_v4 = vmul.f32 %v376_v57, %v376_v57  ;;  %v379_v6 = vsub.f32 %v347_v1, %v363_v2  ;;  %v431_v25 = vsub.f32 (!%p2196_p1), 0.0, %v428_v22  ;;  %1314 = vmatprep.mubr.msk.f32.mxu0 (!%p2196_p1), %vm1663_vm0, %v1662_v24 }
  0xa1   : > { %v394_v7 = vmul.f32 %v377_v62, %v377_v62  ;;  %v395_v9 = vmul.f32 %v378_v3, %v378_v3  ;;  %v434_v26 = vmul.f32 (!%p2196_p1), 0.5, %v428_v22  ;;  %v1958_v27 = vshrl.u32 (!%p2196_p1), %v689_v23, 7 }
  0xa2   : > { %v401_v44 = vadd.f32 %v400_v39, %v386_v33  ;;  %v396_v11 = vmul.f32 %v379_v6, %v379_v6  ;;  %v432_v28 = vmul.f32 (!%p2196_p1), 1.442695, %v431_v25  ;;  %vm1079_vm7 = vcmask (!%p2196_p1), 1045509  }
  0xa3   : > { %v435_v29 = vmul.f32 (!%p2196_p1), 1.442695, %v434_v26  ;;  %v1961_v31 = vsub.s32 (!%p2196_p1), 0, %v1958_v27  ;;  %v855_v32 = vsub.s32 (!%p2196_p1), 2, %v1958_v27  ;;  %v848_v33 = vsub.s32 (!%p2196_p1), 1, %v1958_v27 }
  0xa4   : > { %v402_v49 = vadd.f32 %v401_v44, %v387_v38  ;;  %v862_v34 = vsub.s32 (!%p2196_p1), 3, %v1958_v27  ;;  %1424 = vpow2.f32 (!%p2196_p1), %v432_v28  ;;  %v869_v39 = vsub.s32 (!%p2196_p1), 4, %v1958_v27 }
  0xa5   : > { %1426 = vpow2.f32 (!%p2196_p1), %v435_v29  ;;  %v842_v35 = vrot.slane (!%p2196_p1), %v430_v30, %v1961_v31  ;;  %v856_v36 = vrot.slane (!%p2196_p1), %v430_v30, %v855_v32  ;;  %v849_v37 = vrot.slane (!%p2196_p1), %v430_v30, %v848_v33 }
  0xa6   : > { %v403_v54 = vadd.f32 %v402_v49, %v388_v43  ;;  %v863_v38 = vrot.slane (!%p2196_p1), %v430_v30, %v862_v34  ;;  %v876_v40 = vsub.s32 (!%p2196_p1), 5, %v1958_v27  ;;  %v870_v41 = vrot.slane (!%p2196_p1), %v430_v30, %v869_v39  ;;  %v1973_v43 = vld [vmem:[%s2175_s3] sm:$0xff] (!%p2196_p1) }
  0xa7   : > { %858 = vbcast.lane.b32.xlu1 (!%p2196_p1), %v856_v36, 256  ;;  %v883_v42 = vsub.s32 (!%p2196_p1), 6, %v1958_v27  ;;  %v890_v45 = vsub.s32 (!%p2196_p1), 7, %v1958_v27  ;;  %v1983_v49 = vadd.f32 (!%p2196_p1), 1.837877, %v428_v22  ;;  %vm1081_vm8 = vcmask (!%p2196_p1), 1046534  }
  0xa8   : > { %v404_v59 = vadd.f32 %v403_v54, %v389_v48  ;;  %v877_v44 = vrot.slane (!%p2196_p1), %v430_v30, %v876_v40  ;;  %vm1083_vm9 = vcmask (!%p2196_p1), 1047559   ;;  %vm1090_vm10 = vcmask (!%p2196_p1), 7168  }
  0xa9   : > { %v884_v51 = vrot.slane (!%p2196_p1), %v430_v30, %v883_v42 }
  0xaa   : > { %v405_v0 = vadd.f32 %v404_v59, %v390_v53  ;;  %v891_v53 = vrot.slane (!%p2196_p1), %v430_v30, %v890_v45 }
  0xab   : > { %865 = vbcast.lane.b32.xlu1 (!%p2196_p1), %v863_v38, 256 }
  0xac   : > { %v406_v5 = vadd.f32 %v405_v0, %v391_v58  ;;  %v1664_v58 = vmov (!%p2196_p1), 1.0  }
  0xae   : > { %v407_v8 = vadd.f32 %v406_v5, %v392_v63  ;;  %v1979_v47 = vpop.eup (!%p2196_p1), %1424 }
  0xaf   : > { %v1427_v48 = vpop.eup (!%p2196_p1), %1426  ;;  %1313 = vmatpush3.xpose.msk.msra.mxu0 (!%p2196_p1), %vm446_vm1, %v1979_v47  ;;  %v456_v50 = vmul.f32 (!%p2196_p1), %v1979_v47, %v1973_v43  ;;  %879 = vbcast.lane.b32.xlu1 (!%p2196_p1), %v877_v44, 256 }
  0xb0   : > { %v408_v10 = vadd.f32 %v407_v8, %v393_v4  ;;  %v437_v52 = vmul.f32 (!%p2196_p1), %v1427_v48, %v429_v46  ;;  %1322 = vmatprep.subr.mxu0 (!%p2196_p1), %v1662_v24  ;;  %v1665_v4 = vmov (!%p2196_p1), 1966171168  }
  0xb1   : > { %1318 = vmatpush3.xpose.msk.msra.mxu1 (!%p2196_p1), %vm446_vm1, %v456_v50  ;;  %v609_v54 = vmul.f32 (!%p2196_p1), %v456_v50, %v1973_v43  ;;  %v712_v5 = vunpack.c.l.s4 (!%p2196_p1), %v1665_v4 }
  0xb2   : > { %v409_v12 = vadd.f32 %v408_v10, %v394_v7  ;;  %v438_v55 = vadd.f32 (!%p2196_p1), %v437_v52, %v1973_v43  ;;  %v695_v7 = vmul.f32 (!%p2196_p1), 32.0, %v430_v30 }
  0xb3   : > { %v610_v56 = vadd.f32 (!%p2196_p1), %v609_v54, %v1983_v49  ;;  %893 = vbcast.lane.b32.xlu1 (!%p2196_p1), %v891_v53, 256 }
  0xb4   : > { %v410_v13 = vadd.f32 %v409_v12, %v395_v9  ;;  %1320 = vmatmul.mubr.msk.f32.vlgmr.msra.gmra.mrb[0].mxu1 (!%p2196_p1), %vm446_vm1, %v438_v55  ;;  %v450_v57 = vmul.f32 (!%p2196_p1), %v438_v55, %v438_v55  ;;  %v713_v9 = vunpack.c.0.s8 (!%p2196_p1), %v712_v5  ;;  %v441_v25 = vsub.f32 (!%p2196_p1), %v438_v55, %v1973_v43 }
  0xb6   : > { %v411_v14 = vadd.f32 %v410_v13, %v396_v11  ;;  %1315 = vmatmul.mubr.msk.f32.vlgmr.msra.gmra.mrb[0].mxu0 (!%p2196_p1), %vm446_vm1, %v450_v57  ;;  %v716_v12 = vsub.s32 (!%p2196_p1), %v713_v9, %v1958_v27  ;;  %v442_v29 = vmul.f32 (!%p2196_p1), %v441_v25, %v441_v25 }
  0xb7   : > { %1323 = vmatpush3.xpose.msk.msra.mxu0 (!%p2196_p1), %vm446_vm1, %v610_v56  ;;  %1324 = vmatprep.mubr.msk.f32.mxu0 (!%p2196_p1), %vm1663_vm0, %v1662_v24 }
  0xb8   : > { %412 = vadd.xlane.f32.xlu0 %v411_v14  ;;  %v717_v13 = vrot.slane (!%p2196_p1), %v438_v55, %v716_v12  ;;  %v443_v34 = vmul.f32 (!%p2196_p1), 0.5, %v442_v29 }
  0xba   : > { %1325 = vmatmul.mubr.msk.f32.vlgmr.msra.gmra.mrb[2].mxu0 (!%p2196_p1), %vm446_vm1, %v1664_v58  ;;  %v725_v14 = vcombine.high (!%p2196_p1), %v717_v13, %v717_v13  ;;  %v444_v39 = vmul.f32 (!%p2196_p1), %v1979_v47, %v443_v34 }
  0xce   : > { %844 = vbcast.lane.b32.xlu0 (!%p2196_p1), %v842_v35, 256 }
  0xd2   : > { %851 = vbcast.lane.b32.xlu0 (!%p2196_p1), %v849_v37, 256  ;;  %v2011_v37 = vmul.f32 (!%p2196_p1), -0.5, %v1983_v49  ;;  %v451_v49 = vadd.f32 (!%p2196_p1), 1.837877, %v450_v57 }
  0xd4   : > { %v445_v45 = vsub.f32 (!%p2196_p1), %v2011_v37, %v444_v39  ;;  %v452_v58 = vmul.f32 (!%p2196_p1), -0.5, %v451_v49 }
  0xd6   : > { %872 = vbcast.lane.b32.xlu0 (!%p2196_p1), %v870_v41, 256 }
  0xda   : > { %886 = vbcast.lane.b32.xlu0 (!%p2196_p1), %v884_v51, 256  ;;  %v447_v51 = vsel (!%p2196_p1), %vm446_vm1, %v445_v45, 0.0 }
 0x145   : > { %v413_v15 = vpop.xlane.xlu0 %412 }
 0x146   : > { %v414_v16 = vrot.slane %v413_v15, 4 }
 0x148   : > { %v415_v17 = vadd.f32 %v414_v16, %v413_v15  ;;  %v733_v15 = vrot.slane (!%p2196_p1), %v717_v13, %v716_v12  ;;  %v747_v16 = vrot.slane (!%p2196_p1), %v725_v14, %v716_v12 }
 0x14a   : > { %v416_v18 = vrot.slane %v415_v17, 2  ;;  %v757_v22 = vcombine.high (!%p2196_p1), %v747_v16, %v747_v16 }
 0x14c   : > { %v417_v19 = vadd.f32 %v416_v18, %v415_v17  ;;  %v710_v17 = vcombine.high (!%p2196_p1), %v438_v55, %v438_v55  ;;  %v762_v18 = vrot.slane (!%p2196_p1), %v733_v15, %v1961_v31  ;;  %v774_v30 = vrot.slane (!%p2196_p1), %v757_v22, %v1961_v31 }
 0x14e   : > { %v418_v20 = vrot.slane %v417_v19, 1  ;;  %v799_v23 = vsub.f32 (!%p2196_p1), %v762_v18, %v1973_v43  ;;  %v802_v40 = vsub.f32 (!%p2196_p1), %v774_v30, %v1973_v43 }
 0x150   : > { %v419_v21 = vadd.f32 %v418_v20, %v417_v19  ;;  %v755_v19 = vcombine.high (!%p2196_p1), %v733_v15, %v733_v15  ;;  %v766_v20 = vrot.slane (!%p2196_p1), %v747_v16, %v1961_v31  ;;  %v807_v32 = vmul.f32 (!%p2196_p1), %v799_v23, %v799_v23 }
 0x151   : > { %v810_v52 = vmul.f32 (!%p2196_p1), %v802_v40, %v802_v40 }
 0x152   : > { %1327 = vpush %v419_v21  ;;  %v724_v21 = vrot.slane (!%p2196_p1), %v710_v17, %v716_v12  ;;  %v770_v24 = vrot.slane (!%p2196_p1), %v755_v19, %v1961_v31  ;;  %v800_v26 = vsub.f32 (!%p2196_p1), %v766_v20, %v1973_v43  ;;  %v815_v41 = vmul.f32 (!%p2196_p1), 0.5, %v807_v32 }
 0x154   : > { %v726_v27 = vcombine.high (!%p2196_p1), %v724_v21, %v724_v21  ;;  %v740_v28 = vrot.slane (!%p2196_p1), %v724_v21, %v716_v12  ;;  %v801_v33 = vsub.f32 (!%p2196_p1), %v770_v24, %v1973_v43  ;;  %v808_v35 = vmul.f32 (!%p2196_p1), %v800_v26, %v800_v26 }
 0x155   : > { %v823_v54 = vmul.f32 (!%p2196_p1), %v1979_v47, %v815_v41 }
 0x156   : > { %v754_v36 = vrot.slane (!%p2196_p1), %v726_v27, %v716_v12  ;;  %v778_v38 = vrot.slane (!%p2196_p1), %v740_v28, %v1961_v31  ;;  %v809_v42 = vmul.f32 (!%p2196_p1), %v801_v33, %v801_v33  ;;  %v756_v44 = vcombine.high (!%p2196_p1), %v740_v28, %v740_v28 }
 0x157   : > { %v816_v46 = vmul.f32 (!%p2196_p1), 0.5, %v808_v35 }
 0x158   : > { %v782_v48 = vrot.slane (!%p2196_p1), %v754_v36, %v1961_v31  ;;  %v803_v50 = vsub.f32 (!%p2196_p1), %v778_v38, %v1973_v43  ;;  %v758_v53 = vcombine.high (!%p2196_p1), %v754_v36, %v754_v36  ;;  %v817_v55 = vmul.f32 (!%p2196_p1), 0.5, %v809_v42 }
 0x159   : > { %v786_v56 = vrot.slane (!%p2196_p1), %v756_v44, %v1961_v31 }
 0x15a   : > { %v790_v57 = vrot.slane (!%p2196_p1), %v758_v53, %v1961_v31 }
 0x15c   : > { %v806_v9 = vsub.f32 (!%p2196_p1), %v790_v57, %v1973_v43 }
 0x15e   : > { %v814_v18 = vmul.f32 (!%p2196_p1), %v806_v9, %v806_v9 }
 0x160   : > { %v822_v28 = vmul.f32 (!%p2196_p1), 0.5, %v814_v18 }
 0x162   : > { %v830_v40 = vmul.f32 (!%p2196_p1), %v1979_v47, %v822_v28 }
 0x164   : > { %v838_v49 = vsub.f32 (!%p2196_p1), %v2011_v37, %v830_v40 }
 0x180   : > { %426 = sbr.rel (%p2196_p1) target bundleno = 936 (0x3a8), region = 68 }
 0x183   : > { %s1328_s30 = spop %1327 }
 0x184   : > { %s421_s11 = sadd.f32 %s1328_s30, %s380_s16 }
 0x186   : > { %423 = sst [smem:[#allocation2]] %s421_s11 }
 0x187   : > { %v605_v59 = vpop.f32.mrb[0].mxu1 }
 0x188   : > { %v687_v60 = vmul.f32 2.0, %v605_v59  ;;  %v1321_v61 = vpop.f32.mrb[1].mxu1  ;;  %v824_v59 = vmul.f32 %v1979_v47, %v816_v46 }
 0x189   : > { %v529_v62 = vpop.f32.mrb[0].mxu0  ;;  %v845_v61 = vpop.permute.xlu0 %844 }
 0x18a   : > { %v688_v63 = vsub.f32 %v529_v62, %v687_v60  ;;  %v1316_v0 = vpop.f32.mrb[1].mxu0  ;;  %v804_v60 = vsub.f32 %v782_v48, %v1973_v43  ;;  %v811_v62 = vmul.f32 %v803_v50, %v803_v50  ;;  %v832_v4 = vsub.f32 %v2011_v37, %v824_v59 }
 0x18b   : > { %v818_v0 = vmul.f32 0.5, %v810_v52 }
 0x18c   : > { %v812_v5 = vmul.f32 %v804_v60, %v804_v60 }
 0x18d   : > { %v683_v1 = vpop.f32.mrb[2].mxu0  ;;  %v852_v12 = vpop.permute.xlu0 %851 }
 0x18e   : > { %v692_v2 = vrot.slane %v683_v1, %v1961_v31  ;;  %v1326_v3 = vpop.f32.mrb[3].mxu0  ;;  %v831_v1 = vsub.f32 %v2011_v37, %v823_v54  ;;  %v2035_v14 = vadd.f32 %v852_v12, %v832_v4  ;;  %v820_v15 = vmul.f32 0.5, %v812_v5 }
 0x18f   : > { %v805_v3 = vsub.f32 %v786_v56, %v1973_v43 }
 0x190   : > { %v693_v6 = vadd.f32 %v692_v2, %v688_v63  ;;  %v453_v63 = vsel %vm446_vm1, %v452_v58, 0.0  ;;  %v825_v2 = vmul.f32 %v1979_v47, %v817_v55  ;;  %v910_v22 = vsel %vm446_vm1, %v2035_v14, -inf }
 0x191   : > { %v813_v13 = vmul.f32 %v805_v3, %v805_v3  ;;  %v828_v23 = vmul.f32 %v1979_v47, %v820_v15  ;;  %v873_v27 = vpop.permute.xlu0 %872  ;;  %v911_v30 = vrot.slane %v910_v22, 4 }
 0x192   : > { %v694_v8 = vmul.f32 -0.5, %v693_v6  ;;  %v859_v6 = vpop.permute.xlu1 %858  ;;  %v833_v31 = vsub.f32 %v2011_v37, %v825_v2 }
 0x193   : > { %v821_v21 = vmul.f32 0.5, %v813_v13  ;;  %v836_v33 = vsub.f32 %v2011_v37, %v828_v23  ;;  %v912_v41 = vmax.f32 %v910_v22, %v911_v30 }
 0x194   : > { %v1997_v10 = vadd.f32 %v695_v7, %v694_v8  ;;  %v819_v7 = vmul.f32 0.5, %v811_v62  ;;  %v826_v8 = vmul.f32 %v1979_v47, %v818_v0  ;;  %v2041_v20 = vadd.f32 %v859_v6, %v833_v31 }
 0x195   : > { %v829_v32 = vmul.f32 %v1979_v47, %v821_v21  ;;  %v887_v45 = vpop.permute.xlu0 %886  ;;  %v913_v52 = vrot.slane %v912_v41, 2 }
 0x196   : > { %v698_v11 = vsel %vm697_vm2, %v1997_v10, -inf  ;;  %v827_v16 = vmul.f32 %v1979_v47, %v819_v7  ;;  %v834_v17 = vsub.f32 %v2011_v37, %v826_v8  ;;  %v866_v43 = vpop.permute.xlu1 %865  ;;  %v917_v29 = vsel %vm446_vm1, %v2041_v20, -inf }
 0x197   : > { %699 = vmax.xlane.f32.xlu0 %v698_v11  ;;  %v2032_v11 = vadd.f32 %v845_v61, %v831_v1  ;;  %v918_v38 = vrot.slane %v917_v29, 4  ;;  %v837_v42 = vsub.f32 %v2011_v37, %v829_v32  ;;  %v914_v61 = vmax.f32 %v912_v41, %v913_v52 }
 0x198   : > { %v835_v24 = vsub.f32 %v2011_v37, %v827_v16  ;;  %v2047_v26 = vadd.f32 %v866_v43, %v834_v17 }
 0x199   : > { %v903_v19 = vsel %vm446_vm1, %v2032_v11, -inf  ;;  %v2064_v53 = vadd.f32 %v887_v45, %v837_v42  ;;  %v915_v4 = vrot.slane %v914_v61, 1 }
 0x19a   : > { %v904_v25 = vrot.slane %v903_v19, 4  ;;  %v2053_v34 = vadd.f32 %v873_v27, %v835_v24  ;;  %v880_v35 = vpop.permute.xlu1 %879  ;;  %v924_v39 = vsel %vm446_vm1, %v2047_v26, -inf }
 0x19b   : > { %448 = vadd.xlane.f32.xlu0 %v447_v51  ;;  %v2059_v44 = vadd.f32 %v880_v35, %v836_v33  ;;  %v925_v46 = vrot.slane %v924_v39, 4  ;;  %v919_v51 = vmax.f32 %v917_v29, %v918_v38  ;;  %v2076_v13 = vmax.f32 %v914_v61, %v915_v4 }
 0x19c   : > { %v905_v36 = vmax.f32 %v903_v19, %v904_v25  ;;  %v931_v48 = vsel %vm446_vm1, %v2053_v34, -inf }
 0x19d   : > { %v932_v55 = vrot.slane %v931_v48, 4  ;;  %v938_v47 = vsel %vm446_vm1, %v2059_v44, -inf  ;;  %v926_v56 = vmax.f32 %v924_v39, %v925_v46  ;;  %v920_v59 = vrot.slane %v919_v51, 2 }
 0x19e   : > { %v906_v50 = vrot.slane %v905_v36, 2  ;;  %v894_v54 = vpop.permute.xlu1 %893  ;;  %v939_v62 = vrot.slane %v938_v47, 4  ;;  %v960_v22 = vsub.f32 %v2035_v14, %v2076_v13 }
 0x19f   : > { %454 = vadd.xlane.f32.xlu0 %v453_v63  ;;  %v2068_v60 = vadd.f32 %v894_v54, %v838_v49  ;;  %v945_v63 = vsel %vm446_vm1, %v2064_v53, -inf  ;;  %v933_v0 = vmax.f32 %v931_v48, %v932_v55  ;;  %v927_v37 = vrot.slane %v926_v56, 2 }
 0x1a0   : > { %v907_v58 = vmax.f32 %v905_v36, %v906_v50  ;;  %v921_v1 = vmax.f32 %v919_v51, %v920_v59  ;;  %v946_v2 = vrot.slane %v945_v63, 4  ;;  %v940_v5 = vmax.f32 %v938_v47, %v939_v62 }
 0x1a1   : > { %v952_v3 = vsel %vm446_vm1, %v2068_v60, -inf  ;;  %v934_v6 = vrot.slane %v933_v0, 2  ;;  %v928_v7 = vmax.f32 %v926_v56, %v927_v37  ;;  %v969_v32 = vmul.f32 1.442695, %v960_v22 }
 0x1a2   : > { %v908_v57 = vrot.slane %v907_v58, 1  ;;  %v953_v8 = vrot.slane %v952_v3, 4  ;;  %v922_v31 = vrot.slane %v921_v1, 1  ;;  %v947_v12 = vmax.f32 %v945_v63, %v946_v2 }
 0x1a3   : > { %v941_v15 = vrot.slane %v940_v5, 2  ;;  %v935_v16 = vmax.f32 %v933_v0, %v934_v6  ;;  %v929_v17 = vrot.slane %v928_v7, 1 }
 0x1a4   : > { %v2074_v9 = vmax.f32 %v907_v58, %v908_v57  ;;  %v954_v18 = vmax.f32 %v952_v3, %v953_v8  ;;  %v2080_v43 = vmax.f32 %v921_v1, %v922_v31  ;;  %v948_v21 = vrot.slane %v947_v12, 2 }
 0x1a5   : > { %v942_v23 = vmax.f32 %v940_v5, %v941_v15  ;;  %v936_v24 = vrot.slane %v935_v16, 1  ;;  %v2084_v25 = vmax.f32 %v928_v7, %v929_v17 }
 0x1a6   : > { %v959_v19 = vsub.f32 %v2032_v11, %v2074_v9  ;;  %v955_v27 = vrot.slane %v954_v18, 2  ;;  %v961_v29 = vsub.f32 %v2041_v20, %v2080_v43  ;;  %v949_v30 = vmax.f32 %v947_v12, %v948_v21 }
 0x1a7   : > { %v943_v33 = vrot.slane %v942_v23, 1  ;;  %v2088_v35 = vmax.f32 %v935_v16, %v936_v24  ;;  %v962_v11 = vsub.f32 %v2047_v26, %v2084_v25 }
 0x1a8   : > { %v967_v28 = vmul.f32 1.442695, %v959_v19  ;;  %v956_v36 = vmax.f32 %v954_v18, %v955_v27  ;;  %v971_v14 = vmul.f32 1.442695, %v961_v29  ;;  %v950_v38 = vrot.slane %v949_v30, 1 }
 0x1a9   : > { %v2092_v39 = vmax.f32 %v942_v23, %v943_v33  ;;  %v963_v40 = vsub.f32 %v2053_v34, %v2088_v35  ;;  %v973_v41 = vmul.f32 1.442695, %v962_v11 }
 0x1aa   : > { %1428 = vpow2.f32 %v967_v28  ;;  %v957_v20 = vrot.slane %v956_v36, 1  ;;  %v2096_v42 = vmax.f32 %v949_v30, %v950_v38 }
 0x1ab   : > { %1430 = vpow2.f32 %v969_v32  ;;  %v964_v45 = vsub.f32 %v2059_v44, %v2092_v39  ;;  %v975_v46 = vmul.f32 1.442695, %v963_v40 }
 0x1ac   : > { %1432 = vpow2.f32 %v971_v14  ;;  %v2100_v26 = vmax.f32 %v956_v36, %v957_v20  ;;  %v965_v48 = vsub.f32 %v2064_v53, %v2096_v42 }
 0x1ad   : > { %1434 = vpow2.f32 %v973_v41  ;;  %v977_v50 = vmul.f32 1.442695, %v964_v45 }
 0x1ae   : > { %1436 = vpow2.f32 %v975_v46  ;;  %v966_v34 = vsub.f32 %v2068_v60, %v2100_v26  ;;  %v979_v52 = vmul.f32 1.442695, %v965_v48 }
 0x1af   : > { %1438 = vpow2.f32 %v977_v50 }
 0x1b0   : > { %v981_v47 = vmul.f32 1.442695, %v966_v34  ;;  %1440 = vpow2.f32 %v979_v52 }
 0x1b2   : > { %1442 = vpow2.f32 %v981_v47 }
 0x1b4   : > { %v1429_v51 = vpop.eup %1428 }
 0x1b5   : > { %v1431_v49 = vpop.eup %1430  ;;  %v983_v54 = vsel %vm446_vm1, %v1429_v51, 0.0 }
 0x1b6   : > { %v1433_v55 = vpop.eup %1432  ;;  %v990_v44 = vsel %vm446_vm1, %v1431_v49, 0.0  ;;  %v984_v56 = vrot.slane %v983_v54, 4 }
 0x1b7   : > { %v1435_v58 = vpop.eup %1434  ;;  %v997_v53 = vsel %vm446_vm1, %v1433_v55, 0.0  ;;  %v991_v59 = vrot.slane %v990_v44, 4 }
 0x1b8   : > { %v1437_v61 = vpop.eup %1436  ;;  %v985_v62 = vadd.f32 %v984_v56, %v983_v54  ;;  %v998_v63 = vrot.slane %v997_v53, 4  ;;  %v1004_v60 = vsel %vm446_vm1, %v1435_v58, 0.0 }
 0x1b9   : > { %v992_v0 = vadd.f32 %v991_v59, %v990_v44  ;;  %v1439_v37 = vpop.eup %1438  ;;  %v1005_v57 = vrot.slane %v1004_v60, 4  ;;  %v1011_v1 = vsel %vm446_vm1, %v1437_v61, 0.0 }
 0x1ba   : > { %v986_v2 = vrot.slane %v985_v62, 2  ;;  %v999_v3 = vadd.f32 %v998_v63, %v997_v53  ;;  %v1441_v5 = vpop.eup %1440  ;;  %v1012_v6 = vrot.slane %v1011_v1, 4  ;;  %v1018_v7 = vsel %vm446_vm1, %v1439_v37, 0.0 }
 0x1bb   : > { %v993_v4 = vrot.slane %v992_v0, 2  ;;  %v1006_v8 = vadd.f32 %v1005_v57, %v1004_v60  ;;  %v1019_v17 = vrot.slane %v1018_v7, 4  ;;  %v1025_v18 = vsel %vm446_vm1, %v1441_v5, 0.0 }
 0x1bc   : > { %v987_v31 = vadd.f32 %v986_v2, %v985_v62  ;;  %v1000_v12 = vrot.slane %v999_v3, 2  ;;  %v1443_v15 = vpop.eup %1442  ;;  %v1013_v19 = vadd.f32 %v1012_v6, %v1011_v1  ;;  %v1026_v24 = vrot.slane %v1025_v18, 4 }
 0x1bd   : > { %v994_v16 = vadd.f32 %v993_v4, %v992_v0  ;;  %v1007_v21 = vrot.slane %v1006_v8, 2  ;;  %v1032_v27 = vsel %vm446_vm1, %v1443_v15, 0.0  ;;  %v1020_v29 = vadd.f32 %v1019_v17, %v1018_v7 }
 0x1be   : > { %v988_v22 = vrot.slane %v987_v31, 1  ;;  %v1001_v23 = vadd.f32 %v1000_v12, %v999_v3  ;;  %v1014_v30 = vrot.slane %v1013_v19, 2  ;;  %v1033_v33 = vrot.slane %v1032_v27, 4 }
 0x1bf   : > { %v995_v28 = vrot.slane %v994_v16, 1  ;;  %v1008_v32 = vadd.f32 %v1007_v21, %v1006_v8  ;;  %v1027_v14 = vadd.f32 %v1026_v24, %v1025_v18  ;;  %v1021_v40 = vrot.slane %v1020_v29, 2 }
 0x1c0   : > { %v989_v11 = vadd.f32 %v988_v22, %v987_v31  ;;  %v1002_v36 = vrot.slane %v1001_v23, 1  ;;  %v1015_v41 = vadd.f32 %v1014_v30, %v1013_v19  ;;  %v1034_v45 = vadd.f32 %v1033_v33, %v1032_v27 }
 0x1c1   : > { %v996_v38 = vadd.f32 %v995_v28, %v994_v16  ;;  %v1009_v20 = vrot.slane %v1008_v32, 1  ;;  %v1028_v48 = vrot.slane %v1027_v14, 2  ;;  %v1022_v50 = vadd.f32 %v1021_v40, %v1020_v29 }
 0x1c2   : > { %1444 = vlog2.f32 %v989_v11  ;;  %v1003_v46 = vadd.f32 %v1002_v36, %v1001_v23  ;;  %v1016_v51 = vrot.slane %v1015_v41, 1  ;;  %v1035_v34 = vrot.slane %v1034_v45, 2 }
 0x1c3   : > { %1446 = vlog2.f32 %v996_v38  ;;  %v1010_v49 = vadd.f32 %v1009_v20, %v1008_v32  ;;  %v1029_v52 = vadd.f32 %v1028_v48, %v1027_v14  ;;  %v1023_v54 = vrot.slane %v1022_v50, 1 }
 0x1c4   : > { %1448 = vlog2.f32 %v1003_v46  ;;  %v1017_v55 = vadd.f32 %v1016_v51, %v1015_v41  ;;  %v1036_v44 = vadd.f32 %v1035_v34, %v1034_v45 }
 0x1c5   : > { %1450 = vlog2.f32 %v1010_v49  ;;  %v1030_v47 = vrot.slane %v1029_v52, 1  ;;  %v1024_v56 = vadd.f32 %v1023_v54, %v1022_v50 }
 0x1c6   : > { %1452 = vlog2.f32 %v1017_v55  ;;  %v1037_v59 = vrot.slane %v1036_v44, 1 }
 0x1c7   : > { %v1031_v61 = vadd.f32 %v1030_v47, %v1029_v52  ;;  %1454 = vlog2.f32 %v1024_v56 }
 0x1c8   : > { %v1038_v0 = vadd.f32 %v1037_v59, %v1036_v44 }
 0x1c9   : > { %1456 = vlog2.f32 %v1031_v61 }
 0x1ca   : > { %1458 = vlog2.f32 %v1038_v0 }
 0x1cc   : > { %v1445_v58 = vpop.eup %1444 }
 0x1cd   : > { %v1447_v53 = vpop.eup %1446  ;;  %v1040_v63 = vmul.f32 0.6931472, %v1445_v58 }
 0x1ce   : > { %v1449_v62 = vpop.eup %1448  ;;  %v1042_v60 = vmul.f32 0.6931472, %v1447_v53 }
 0x1cf   : > { %v1451_v37 = vpop.eup %1450  ;;  %v1044_v57 = vmul.f32 0.6931472, %v1449_v62  ;;  %v1055_v1 = vadd.f32 %v1040_v63, %v2074_v9 }
 0x1d0   : > { %v1056_v2 = vadd.f32 %v1042_v60, %v2076_v13  ;;  %v1453_v3 = vpop.eup %1452  ;;  %v1046_v4 = vmul.f32 0.6931472, %v1451_v37 }
 0x1d1   : > { %v1057_v5 = vadd.f32 %v1044_v57, %v2080_v43  ;;  %v1455_v7 = vpop.eup %1454  ;;  %v1048_v8 = vmul.f32 0.6931472, %v1453_v3 }
 0x1d2   : > { %v1072_v6 = vsel %vm1071_vm3, %v1056_v2, %v1055_v1  ;;  %v1058_v12 = vadd.f32 %v1046_v4, %v2084_v25  ;;  %v1050_v17 = vmul.f32 0.6931472, %v1455_v7 }
 0x1d3   : > { %v1074_v16 = vsel %vm1073_vm4, %v1057_v5, %v1072_v6  ;;  %v1457_v9 = vpop.eup %1456  ;;  %v1059_v18 = vadd.f32 %v1048_v8, %v2088_v35 }
 0x1d4   : > { %v1076_v19 = vsel %vm1075_vm5, %v1058_v12, %v1074_v16  ;;  %v1459_v43 = vpop.eup %1458  ;;  %v1052_v21 = vmul.f32 0.6931472, %v1457_v9  ;;  %v1060_v22 = vadd.f32 %v1050_v17, %v2092_v39 }
 0x1d5   : > { %v1078_v23 = vsel %vm1077_vm6, %v1059_v18, %v1076_v19  ;;  %v1054_v24 = vmul.f32 0.6931472, %v1459_v43 }
 0x1d6   : > { %v1061_v25 = vadd.f32 %v1052_v21, %v2096_v42 }
 0x1d7   : > { %v1062_v27 = vadd.f32 %v1054_v24, %v2100_v26 }
 0x224   : > { %v700_v31 = vpop.xlane.xlu0 %699 }
 0x225   : > { %v701_v15 = vsub.f32 %v1997_v10, %v700_v31  ;;  %v1080_v10 = vsel %vm1079_vm7, %v1060_v22, %v1078_v23 }
 0x226   : > { %v1082_v28 = vsel %vm1081_vm8, %v1061_v25, %v1080_v10 }
 0x227   : > { %v702_v13 = vmul.f32 1.442695, %v701_v15  ;;  %v1084_v30 = vsel %vm1083_vm9, %v1062_v27, %v1082_v28 }
 0x228   : > { %v1086_v32 = vsel %vm446_vm1, %v1084_v30, 0.0  ;;  %v449_v33 = vpop.xlane.xlu0 %448 }
 0x229   : > { %1460 = vpow2.f32 %v702_v13 }
 0x22c   : > { %v455_v38 = vpop.xlane.xlu0 %454 }
 0x233   : > { %v1461_v29 = vpop.eup %1460 }
 0x234   : > { %v704_v35 = vsel %vm697_vm2, %v1461_v29, 0.0 }
 0x235   : > { %705 = vadd.xlane.f32.xlu1 %v704_v35 }
 0x239   : > { %1087 = vadd.xlane.f32.xlu1 %v1086_v32 }
 0x2c2   : > { %v706_v39 = vpop.xlane.xlu1 %705 }
 0x2c3   : > { %1462 = vlog2.f32 %v706_v39 }
 0x2c6   : > { %v1088_v14 = vpop.xlane.xlu1 %1087 }
 0x2c7   : > { %v1122_v41 = vsub.f32 %v1088_v14, %v455_v38 }
 0x2c9   : > { %v1123_v46 = vsel %vm1090_vm10, %v1122_v41, 0.0 }
 0x2cd   : > { %v1463_v11 = vpop.eup %1462 }
 0x2ce   : > { %v708_v36 = vmul.f32 0.6931472, %v1463_v11 }
 0x2d0   : > { %v709_v42 = vadd.f32 %v708_v36, %v700_v31 }
 0x2d2   : > { %v1089_v40 = vsub.f32 %v449_v33, %v709_v42  ;;  %v1106_v26 = vsub.f32 %v709_v42, %v1088_v14 }
 0x2d4   : > { %v1107_v20 = vsel %vm1090_vm10, %v1106_v26, 0.0  ;;  %v1091_v45 = vsel %vm1090_vm10, %v1089_v40, 0.0 }
 0x2d5   : > { %1108 = vadd.xlane.f32.xlu1 %v1107_v20  ;;  %1092 = vadd.xlane.f32.xlu0 %v1091_v45 }
 0x2d9   : > { %1124 = vadd.xlane.f32.xlu0 %v1123_v46 }
 0x362   : > { %v1109_v48 = vpop.xlane.xlu1 %1108  ;;  %v1093_v50 = vpop.xlane.xlu0 %1092 }
 0x363   : > { %v1110_v51 = vrot.slane %v1109_v48, 4  ;;  %v1094_v49 = vrot.slane %v1093_v50, 4 }
 0x365   : > { %v1111_v34 = vadd.f32 %v1110_v51, %v1109_v48  ;;  %v1095_v52 = vadd.f32 %v1094_v49, %v1093_v50 }
 0x366   : > { %v1125_v54 = vpop.xlane.xlu0 %1124 }
 0x367   : > { %v1112_v55 = vrot.slane %v1111_v34, 2  ;;  %v1096_v44 = vrot.slane %v1095_v52, 2  ;;  %v1126_v47 = vrot.slane %v1125_v54, 4 }
 0x369   : > { %v1113_v56 = vadd.f32 %v1112_v55, %v1111_v34  ;;  %v1127_v58 = vadd.f32 %v1126_v47, %v1125_v54  ;;  %v1097_v53 = vadd.f32 %v1096_v44, %v1095_v52 }
 0x36b   : > { %v1128_v59 = vrot.slane %v1127_v58, 2  ;;  %v1098_v61 = vrot.slane %v1097_v53, 1  ;;  %v1114_v62 = vrot.slane %v1113_v56, 1 }
 0x36d   : > { %v1129_v63 = vadd.f32 %v1128_v59, %v1127_v58  ;;  %v1099_v60 = vadd.f32 %v1098_v61, %v1097_v53  ;;  %v1115_v0 = vadd.f32 %v1114_v62, %v1113_v56 }
 0x36f   : > { %1329 = vpush %v1099_v60  ;;  %v1130_v37 = vrot.slane %v1129_v63, 1 }
 0x370   : > { %1331 = vpush %v1115_v0 }
 0x371   : > { %v1131_v57 = vadd.f32 %v1130_v37, %v1129_v63 }
 0x373   : > { %1333 = vpush %v1131_v57 }
 0x3a0   : > { %s1330_s14 = spop %1329 }
 0x3a1   : > { %s1103_s10 = smul.f32 0.125, %s1330_s14  ;;  %s1332_s19 = spop %1331 }
 0x3a2   : > { %s1119_s23 = smul.f32 0.125, %s1332_s19 }
 0x3a3   : > { %1105 = sst [smem:[#allocation3]] %s1103_s10 }
 0x3a4   : > { %1121 = sst [smem:[#allocation3 + $0x1]] %s1119_s23  ;;  %s1334_s18 = spop %1333 }
 0x3a5   : > { %s1135_s28 = smul.f32 0.125, %s1334_s18 }
 0x3a7   : > { %1137 = sst [smem:[#allocation3 + $0x2]] %s1135_s28 }
 0x3a8 PF: > { %p1380_p3 = scmp.eq.s32.totalorder %s1738_s0, 1  ;;  %s1142_s29 = sld [smem:[#allocation2]] }
 0x3a9   : > { %s1143_s17 = sld [smem:[#allocation3]]  ;;  %s1295_s24 = sld [smem:[#allocation3 + $0x1]] }
 0x3aa   : > { %s1296_s20 = sld [smem:[#allocation3 + $0x2]]  ;;  %s1146_s27 = sld [smem:[#allocation5]] }
 0x3ab   : > { %s1297_s16 = sld [smem:[#allocation5 + $0x1]]  ;;  %s1298_s30 = sld [smem:[#allocation5 + $0x2]] }
 0x3ac   : > { %s1299_s11 = sld [smem:[#allocation5 + $0x3]]  ;;  %1353 = sst [smem:[#allocation14 + $0x3]] (%p1380_p3), %s1661_s15 }
 0x3ad   : > { %s1590_s28 = scalar_lea.hbm %s2179_s7, 16 }
 0x3ae   : > { %1351 = sst [smem:[#allocation14 + $0x1]] (%p1380_p3), %s1142_s29  ;;  %s1152_s8 = smul.f32 0.125, %s1142_s29 }
 0x3af   : > { %1354 = sst [smem:[#allocation14 + $0x4]] (%p1380_p3), %s1295_s24  ;;  %p1591_p5 = scmp.ne.s32.totalorder %s2179_s7, %s1590_s28 }
 0x3b0   : > { %1352 = sst [smem:[#allocation14 + $0x2]] (%p1380_p3), %s1296_s20  ;;  %s1153_s9 = smul.f32 %s1146_s27, %s1143_s17 }
 0x3b1   : > { %s1155_s25 = smul.f32 %s1297_s16, %s1295_s24  ;;  %1355 = sst [smem:[#allocation14 + $0x5]] (%p1380_p3), %s1143_s17 }
 0x3b2   : > { %s1156_s26 = smul.f32 %s1299_s11, %s1298_s30  ;;  %s1154_s14 = sadd.f32 %s1153_s9, %s1152_s8 }
 0x3b3   : > { %p1592_p2 = pnand %p1591_p5, %p1380_p3  ;;  %p1596_p12 = scmp.lt.u32.totalorder %s1590_s28, %s2179_s7 }
 0x3b4   : > { %s1157_s10 = smul.f32 %s1296_s20, %s1156_s26 }
 0x3b5   : > { %p1593_p6 = pneg %p1592_p2 }
 0x3b6   : > { %s1158_s19 = sadd.f32 %s1157_s10, %s1155_s25 }
 0x3b7   : > { %p1598_p13 = pnand %p1596_p12, %p1593_p6 }
 0x3b8   : > { %s1159_s23 = sadd.f32 %s1158_s19, %s1154_s14 }
 0x3ba   : > { %1350 = sst [smem:[#allocation14]] (%p1380_p3), %s1159_s23 }
 0x3bb   : > { %1601 = shalt.err (!%p1598_p13)
}
 0x3bc   : > { %s1666_s20 = smov [#allocation14]  }
 0x3bd   : > { %1357 = dma.smem_to_hbm (%p1380_p3), %s1666_s20, 16, %s2179_s7, [#allocation8]  }
 0x3be   : > { %1637 = dma.done.wait (%p1380_p3), [#allocation8], 16  }
 0x3bf   : > { %1639 = vsyncadd (%p1380_p3), [#allocation8], 4294967280 }
 0x3c0   : > { %1185 = sfence }
 0x3c1 PF: > { %p26_p10 = scmp.ge.s32.totalorder %s1766_s22, 4   ;;  %s2197_s11 = smov %s1646_s12 }
 0x3c2   : > { %s2198_s12 = smov %s1650_s13  ;;  %s2199_s13 = smov %s1825_s21 }
 0x3c3   : > { %s2200_s14 = smov %s1766_s22  ;;  %28 = sbr.rel (!%p26_p10) target bundleno = 19 (0x13), region = 125 }
 0x3ca   :  { %1191 = vsyncpa [#allocation7], 1 }
 0x3cb   :  { %1193 = vsyncpa [#allocation7 + $0x1], 1 }
 0x3cc   :  { %1194 = vsyncpa [#allocation10], 1 }
 0x3cd   :  { %1196 = vsyncpa [#allocation10 + $0x1], 1 }
 0x3ce   :  { %1197 = vsyncpa [#allocation13], 1 }
 0x3cf   :  { %1198 = vsyncpa [#allocation8], 1 }
 0x3d0   :  { %1200 = vsyncpa [#allocation8 + $0x1], 1 }

</bundles_post_ra>
